<compile_context>
chip_gen: v5e
topology: v5e:2x2
jax: 0.10.0
libtpu: 0.0.40
codegen_flags: <defaults>
</compile_context>

<pallas_src>
import jax
import jax.numpy as jnp
from jax.experimental import pallas as pl
from jax.experimental.pallas import tpu as pltpu

BN_EPS = 1e-5


# ----------------------------------------------------------------------------
# Parameter construction (deterministic, synthetic) + BN folding (glue)
# ----------------------------------------------------------------------------
def _dense_init(key, cin, cout, w_scale=1.0):
    kw, kb = jax.random.split(key)
    w = jax.random.normal(kw, (cin, cout), jnp.float32) * (w_scale / jnp.sqrt(cin))
    b = jax.random.normal(kb, (cout,), jnp.float32) * (0.05 * w_scale)
    return w, b


def _bn_init(key, c):
    k1, k2, k3, k4 = jax.random.split(key, 4)
    gamma = jax.random.uniform(k1, (c,), jnp.float32, minval=0.5, maxval=1.5)
    beta = jax.random.normal(k2, (c,), jnp.float32) * 0.1
    mean = jax.random.normal(k3, (c,), jnp.float32) * 0.1
    var = jax.random.uniform(k4, (c,), jnp.float32, minval=0.5, maxval=1.5)
    return gamma, beta, mean, var


def _fold_bn(w, b, gamma, beta, mean, var):
    """Fold eval-mode BatchNorm1d into (Cin,Cout) weight / (1,Cout) bias."""
    scale = gamma / jnp.sqrt(var + BN_EPS)
    return w * scale[None, :], ((b - mean) * scale + beta).reshape(1, -1)


def _build_layer(key, cin, cout, with_bn=True, extra_bias=None, w_scale=1.0):
    kd, kbn = jax.random.split(key)
    w, b = _dense_init(kd, cin, cout, w_scale)
    if with_bn:
        return _fold_bn(w, b, *_bn_init(kbn, cout))
    b = b.reshape(1, -1)
    if extra_bias is not None:
        b = b + extra_bias.reshape(1, -1)
    return w, b


def build_stn_params(key, conv_channels, fc_channels):
    conv_dims = [3] + list(conv_channels)
    fc_dims = [conv_channels[-1]] + list(fc_channels)
    n_layers = (len(conv_dims) - 1) + (len(fc_dims) - 1) + 1
    keys = jax.random.split(key, n_layers)
    k = 0
    conv_layers = []
    for i in range(len(conv_dims) - 1):
        conv_layers.append(_build_layer(keys[k], conv_dims[i], conv_dims[i + 1])); k += 1
    fc_layers = []
    for i in range(len(fc_dims) - 1):
        fc_layers.append(_build_layer(keys[k], fc_dims[i], fc_dims[i + 1])); k += 1
    # Last FC: fc_channels[-1] -> 9, no BN; identity bias folded in (x + iden).
    # Small w_scale keeps trans near identity (like a trained STN), so the
    # bf16-vs-f32 validation below stays well conditioned.
    iden = jnp.array([1, 0, 0, 0, 1, 0, 0, 0, 1], jnp.float32)
    fc_layers.append(_build_layer(keys[k], fc_channels[-1], 9,
                                  with_bn=False, extra_bias=iden, w_scale=0.1))
    return conv_layers, fc_layers


def build_feat_params(key, channels):
    dims = [3] + list(channels)
    keys = jax.random.split(key, len(dims) - 1)
    return [_build_layer(keys[i], dims[i], dims[i + 1]) for i in range(len(dims) - 1)]


# ----------------------------------------------------------------------------
# Fused Pallas kernel (STN3d + feature trunk + output assembly)
# ----------------------------------------------------------------------------
def make_fused_kernel(n_stn_conv, n_stn_fc, n_feat_conv, bt, n_pts, c0, clast,
                      global_feat):
    def kernel(*refs):
        pos = 0
        x_ref = refs[pos]; pos += 1
        stn_conv = [(refs[pos + 2 * i], refs[pos + 2 * i + 1]) for i in range(n_stn_conv)]
        pos += 2 * n_stn_conv
        stn_fc = [(refs[pos + 2 * i], refs[pos + 2 * i + 1]) for i in range(n_stn_fc)]
        pos += 2 * n_stn_fc
        feat_conv = [(refs[pos + 2 * i], refs[pos + 2 * i + 1]) for i in range(n_feat_conv)]
        pos += 2 * n_feat_conv
        out_ref = refs[pos]

        M = bt * n_pts

        # x block is lane-dense (bt, 3, N) bf16; upcast once, transpose to
        # points-major (one small XLU transpose per b), flatten batch into M.
        x_cn = x_ref[...].astype(jnp.float32)              # (bt, 3, N)
        x_nc = jnp.transpose(x_cn, (0, 2, 1))              # (bt, N, 3)
        x_flat = x_nc.reshape(M, 3)                        # (bt*N, 3)

        def dense(h, w_ref, b_ref):
            # bf16 MXU operands, f32 accumulation, f32 bias.
            return jnp.dot(h.astype(jnp.bfloat16), w_ref[...],
                           preferred_element_type=jnp.float32) + b_ref[...]

        # ---- STN3d per-point trunk, batch folded into M: relu(bn(conv)) stack.
        h = x_flat
        for w_ref, b_ref in stn_conv:
            h = jnp.maximum(dense(h, w_ref, b_ref), 0.0)    # (bt*N, C)
        g = jnp.max(h.reshape(bt, n_pts, -1), axis=1)       # (bt, C_stn) max over points

        # ---- STN3d FC head (batched; last layer: no BN/relu, identity in bias).
        for i, (w_ref, b_ref) in enumerate(stn_fc):
            g = dense(g, w_ref, b_ref)
            if i < n_stn_fc - 1:
                g = jnp.maximum(g, 0.0)
        # g: (bt, 9); row b is the flattened 3x3 transform for batch element b.

        # ---- torch.bmm(x, trans): the only per-batch weight -> tiny per-b matmul.
        xt_rows = []
        for b in range(bt):                                 # static, small loop
            gb = g[b:b + 1, :]                              # (1, 9)
            trans_b = jnp.concatenate(
                [gb[:, 0:3], gb[:, 3:6], gb[:, 6:9]], axis=0)           # (3, 3)
            xt_rows.append(jnp.dot(x_nc[b], trans_b,
                                   preferred_element_type=jnp.float32))  # (N, 3)
        x_trans = jnp.concatenate(xt_rows, axis=0)          # (bt*N, 3)

        # ---- Feature trunk, batch folded into M (shared weights conv0..last).
        h = jnp.maximum(dense(x_trans, *feat_conv[0]), 0.0)  # (bt*N, c0)
        pointfeat = h
        for i in range(1, n_feat_conv):
            h = dense(h, *feat_conv[i])
            if i < n_feat_conv - 1:                          # last conv: bn only, no relu
                h = jnp.maximum(h, 0.0)
        glob = jnp.max(h.reshape(bt, n_pts, clast), axis=1)  # (bt, clast)

        if global_feat:
            out_ref[...] = glob                              # single (bt, clast) store
        else:
            # torch.cat([glob.repeat(1,1,N), pointfeat], dim=1), lane-dense stores:
            #  - global slab: one (bt, clast, N) lane-broadcast store
            #  - pointfeat:   ONE block transpose, then per-b lane-contiguous slices
            out_ref[:, :clast, :] = jnp.broadcast_to(
                glob[:, :, None], (bt, clast, n_pts))
            pf_t = jnp.transpose(pointfeat)                  # (c0, bt*N)
            for b in range(bt):
                out_ref[b, clast:clast + c0, :] = pf_t[:, b * n_pts:(b + 1) * n_pts]

    return kernel


# ----------------------------------------------------------------------------
# Wrapper (single pallas_call)
# ----------------------------------------------------------------------------
def _pick_batch_block(B):
    # Keep grid length >= 2 (cross-step pipelining; megacore sharding on v7x)
    # while using reasonably fat blocks. Re-derive the cap for tighter-VMEM chips
    # (v7x: 64 MiB physical / 32 MiB scoped default) if bt is raised.
    bt = min(8, max(1, B // 2))
    while B % bt:
        bt -= 1
    return bt


def pointnetfeat_forward(x, stn_conv, stn_fc, feat_conv, global_feat,
                         batch_block=None):
    B, N, _ = x.shape
    bt = _pick_batch_block(B) if batch_block is None else batch_block
    assert B % bt == 0, (B, bt)
    c0 = feat_conv[0][0].shape[1]
    clast = feat_conv[-1][0].shape[1]

    # Lane-dense input layout (channels on sublanes, points on lanes) + bf16.
    x_cn = jnp.transpose(x, (0, 2, 1)).astype(jnp.bfloat16)      # (B, 3, N)

    def cast_params(layers):
        return [(w.astype(jnp.bfloat16), b.astype(jnp.float32)) for w, b in layers]

    layers = cast_params(stn_conv) + cast_params(stn_fc) + cast_params(feat_conv)

    inputs = [x_cn]
    in_specs = [pl.BlockSpec((bt, 3, N), lambda b: (b, 0, 0))]
    for w, bias in layers:
        inputs += [w, bias]
        in_specs += [pl.BlockSpec(w.shape, lambda b: (0, 0)),
                     pl.BlockSpec(bias.shape, lambda b: (0, 0))]

    if global_feat:
        out_shape = jax.ShapeDtypeStruct((B, clast), jnp.float32)
        out_spec = pl.BlockSpec((bt, clast), lambda b: (b, 0))
    else:
        out_shape = jax.ShapeDtypeStruct((B, clast + c0, N), jnp.float32)
        out_spec = pl.BlockSpec((bt, clast + c0, N), lambda b: (b, 0, 0))

    return pl.pallas_call(
        make_fused_kernel(len(stn_conv), len(stn_fc), len(feat_conv),
                          bt, N, c0, clast, global_feat),
        out_shape=out_shape,
        grid=(B // bt,),
        in_specs=in_specs,
        out_specs=out_spec,
        compiler_params=pltpu.CompilerParams(
            dimension_semantics=("parallel",)),   # batch blocks are independent
    )(*inputs)


# ----------------------------------------------------------------------------
# Pure-JAX f32 reference (same folded params)
# ----------------------------------------------------------------------------
def ref_pointnetfeat(x, stn_conv, stn_fc, feat_conv, global_feat):
    B, N, _ = x.shape
    h = x
    for w, b in stn_conv:
        h = jnp.maximum(h @ w + b, 0.0)
    g = jnp.max(h, axis=1)
    for i, (w, b) in enumerate(stn_fc):
        g = g @ w + b
        if i < len(stn_fc) - 1:
            g = jnp.maximum(g, 0.0)
    trans = g.reshape(B, 3, 3)
    xt = jnp.einsum("bni,bij->bnj", x, trans)              # torch.bmm(x, trans)
    w0, b0 = feat_conv[0]
    h = jnp.maximum(xt @ w0 + b0, 0.0)
    pointfeat = h
    for i in range(1, len(feat_conv)):
        w, b = feat_conv[i]
        h = h @ w + b
        if i < len(feat_conv) - 1:
            h = jnp.maximum(h, 0.0)
    glob = jnp.max(h, axis=1)
    if global_feat:
        return glob
    rep = jnp.broadcast_to(glob[:, :, None], (B, glob.shape[-1], N))
    return jnp.concatenate([rep, pointfeat.transpose(0, 2, 1)], axis=1)


# ----------------------------------------------------------------------------
if __name__ == "__main__":
    B, N = 2, 128
    stn_conv_channels = [16, 32, 64]   # cfg.std_cfg.conv_channels
    stn_fc_channels = [32, 16]         # cfg.std_cfg.fc_channels
    channels = [16, 32, 64]            # cfg.channels

    key = jax.random.PRNGKey(0)
    kx, kstn, kfeat = jax.random.split(key, 3)
    x = jax.random.normal(kx, (B, N, 3), jnp.float32)

    stn_conv, stn_fc = build_stn_params(kstn, stn_conv_channels, stn_fc_channels)
    feat_conv = build_feat_params(kfeat, channels)

    # Tolerance covers bf16 MXU operands (f32 accumulation) vs. pure f32 reference
    # across the ~8 chained matmul layers.
    ATOL, RTOL = 1e-1, 5e-2

    # cfg.global_feat = False (concatenated global + point features)
    out = pointnetfeat_forward(x, stn_conv, stn_fc, feat_conv, global_feat=False)
    out = jax.block_until_ready(out)
    ref = ref_pointnetfeat(x, stn_conv, stn_fc, feat_conv, global_feat=False)
    assert out.shape == ref.shape, (out.shape, ref.shape)
    assert jnp.allclose(out, ref, atol=ATOL, rtol=RTOL), (
        float(jnp.max(jnp.abs(out - ref))))

    # also exercise the global_feat = True path
    out_g = pointnetfeat_forward(x, stn_conv, stn_fc, feat_conv, global_feat=True)
    out_g = jax.block_until_ready(out_g)
    ref_g = ref_pointnetfeat(x, stn_conv, stn_fc, feat_conv, global_feat=True)
    assert out_g.shape == ref_g.shape, (out_g.shape, ref_g.shape)
    assert jnp.allclose(out_g, ref_g, atol=ATOL, rtol=RTOL), (
        float(jnp.max(jnp.abs(out_g - ref_g))))

    print("KERNEL_OK")
</pallas_src>

<mosaic_0001>
module attributes {stable_mosaic.version = 11 : i64} {
  func.func @kernel(%arg0: i32, %arg1: memref<1x3x128xbf16, #tpu.memory_space<vmem>>, %arg2: memref<3x16xbf16, #tpu.memory_space<vmem>>, %arg3: memref<1x16xf32, #tpu.memory_space<vmem>>, %arg4: memref<16x32xbf16, #tpu.memory_space<vmem>>, %arg5: memref<1x32xf32, #tpu.memory_space<vmem>>, %arg6: memref<32x64xbf16, #tpu.memory_space<vmem>>, %arg7: memref<1x64xf32, #tpu.memory_space<vmem>>, %arg8: memref<64x32xbf16, #tpu.memory_space<vmem>>, %arg9: memref<1x32xf32, #tpu.memory_space<vmem>>, %arg10: memref<32x16xbf16, #tpu.memory_space<vmem>>, %arg11: memref<1x16xf32, #tpu.memory_space<vmem>>, %arg12: memref<16x9xbf16, #tpu.memory_space<vmem>>, %arg13: memref<1x9xf32, #tpu.memory_space<vmem>>, %arg14: memref<3x16xbf16, #tpu.memory_space<vmem>>, %arg15: memref<1x16xf32, #tpu.memory_space<vmem>>, %arg16: memref<16x32xbf16, #tpu.memory_space<vmem>>, %arg17: memref<1x32xf32, #tpu.memory_space<vmem>>, %arg18: memref<32x64xbf16, #tpu.memory_space<vmem>>, %arg19: memref<1x64xf32, #tpu.memory_space<vmem>>, %arg20: memref<1x80x128xf32, #tpu.memory_space<vmem>>) attributes {dimension_semantics = [#tpu.dimension_semantics<parallel>], iteration_bounds = array<i64: 2>, scalar_prefetch = 0 : i64, scratch_operands = 0 : i64, tpu.core_type = #tpu.core_type<tc>, window_params = [{transform_indices = @transform_0, window_bounds = array<i64: 1, 3, 128>}, {pipeline_mode = #tpu.pipeline_mode<synchronous>, transform_indices = @transform_1, window_bounds = array<i64: 3, 16>}, {pipeline_mode = #tpu.pipeline_mode<synchronous>, transform_indices = @transform_2, window_bounds = array<i64: 1, 16>}, {pipeline_mode = #tpu.pipeline_mode<synchronous>, transform_indices = @transform_3, window_bounds = array<i64: 16, 32>}, {pipeline_mode = #tpu.pipeline_mode<synchronous>, transform_indices = @transform_4, window_bounds = array<i64: 1, 32>}, {pipeline_mode = #tpu.pipeline_mode<synchronous>, transform_indices = @transform_5, window_bounds = array<i64: 32, 64>}, {pipeline_mode = #tpu.pipeline_mode<synchronous>, transform_indices = @transform_6, window_bounds = array<i64: 1, 64>}, {pipeline_mode = #tpu.pipeline_mode<synchronous>, transform_indices = @transform_7, window_bounds = array<i64: 64, 32>}, {pipeline_mode = #tpu.pipeline_mode<synchronous>, transform_indices = @transform_8, window_bounds = array<i64: 1, 32>}, {pipeline_mode = #tpu.pipeline_mode<synchronous>, transform_indices = @transform_9, window_bounds = array<i64: 32, 16>}, {pipeline_mode = #tpu.pipeline_mode<synchronous>, transform_indices = @transform_10, window_bounds = array<i64: 1, 16>}, {pipeline_mode = #tpu.pipeline_mode<synchronous>, transform_indices = @transform_11, window_bounds = array<i64: 16, 9>}, {pipeline_mode = #tpu.pipeline_mode<synchronous>, transform_indices = @transform_12, window_bounds = array<i64: 1, 9>}, {pipeline_mode = #tpu.pipeline_mode<synchronous>, transform_indices = @transform_13, window_bounds = array<i64: 3, 16>}, {pipeline_mode = #tpu.pipeline_mode<synchronous>, transform_indices = @transform_14, window_bounds = array<i64: 1, 16>}, {pipeline_mode = #tpu.pipeline_mode<synchronous>, transform_indices = @transform_15, window_bounds = array<i64: 16, 32>}, {pipeline_mode = #tpu.pipeline_mode<synchronous>, transform_indices = @transform_16, window_bounds = array<i64: 1, 32>}, {pipeline_mode = #tpu.pipeline_mode<synchronous>, transform_indices = @transform_17, window_bounds = array<i64: 32, 64>}, {pipeline_mode = #tpu.pipeline_mode<synchronous>, transform_indices = @transform_18, window_bounds = array<i64: 1, 64>}, {transform_indices = @transform_19, window_bounds = array<i64: 1, 80, 128>}]} {
    %c0 = arith.constant 0 : index
    %c0_0 = arith.constant 0 : index
    %c0_1 = arith.constant 0 : index
    %0 = vector.load %arg1[%c0, %c0_0, %c0_1] : memref<1x3x128xbf16, #tpu.memory_space<vmem>>, vector<1x3x128xbf16>
    %1 = arith.extf %0 : vector<1x3x128xbf16> to vector<1x3x128xf32>
    %2 = tpu.transpose %1, [0, 2, 1] : vector<1x3x128xf32> -> vector<1x128x3xf32>
    %3 = vector.shape_cast %2 : vector<1x128x3xf32> to vector<128x3xf32>
    %4 = arith.truncf %3 : vector<128x3xf32> to vector<128x3xbf16>
    %c0_2 = arith.constant 0 : index
    %c0_3 = arith.constant 0 : index
    %5 = vector.load %arg2[%c0_2, %c0_3] : memref<3x16xbf16, #tpu.memory_space<vmem>>, vector<3x16xbf16>
    %cst = arith.constant dense<0.000000e+00> : vector<128x16xf32>
    %6 = tpu.matmul %4, %5, %cst {dimension_numbers = #tpu.dot_dimension_numbers<[1], [0], [0], [1], [0, 0, 1, 1], [], []>} : vector<128x3xbf16>, vector<3x16xbf16>, vector<128x16xf32> -> vector<128x16xf32>
    %c0_4 = arith.constant 0 : index
    %c0_5 = arith.constant 0 : index
    %7 = vector.load %arg3[%c0_4, %c0_5] : memref<1x16xf32, #tpu.memory_space<vmem>>, vector<1x16xf32>
    %8 = vector.broadcast %7 : vector<1x16xf32> to vector<128x16xf32>
    %9 = arith.addf %6, %8 : vector<128x16xf32>
    %cst_6 = arith.constant 0.000000e+00 : f32
    %10 = vector.broadcast %cst_6 : f32 to vector<128x16xf32>
    %11 = arith.maximumf %9, %10 : vector<128x16xf32>
    %12 = arith.truncf %11 : vector<128x16xf32> to vector<128x16xbf16>
    %c0_7 = arith.constant 0 : index
    %c0_8 = arith.constant 0 : index
    %13 = vector.load %arg4[%c0_7, %c0_8] : memref<16x32xbf16, #tpu.memory_space<vmem>>, vector<16x32xbf16>
    %cst_9 = arith.constant dense<0.000000e+00> : vector<128x32xf32>
    %14 = tpu.matmul %12, %13, %cst_9 {dimension_numbers = #tpu.dot_dimension_numbers<[1], [0], [0], [1], [0, 0, 1, 1], [], []>} : vector<128x16xbf16>, vector<16x32xbf16>, vector<128x32xf32> -> vector<128x32xf32>
    %c0_10 = arith.constant 0 : index
    %c0_11 = arith.constant 0 : index
    %15 = vector.load %arg5[%c0_10, %c0_11] : memref<1x32xf32, #tpu.memory_space<vmem>>, vector<1x32xf32>
    %16 = vector.broadcast %15 : vector<1x32xf32> to vector<128x32xf32>
    %17 = arith.addf %14, %16 : vector<128x32xf32>
    %cst_12 = arith.constant 0.000000e+00 : f32
    %18 = vector.broadcast %cst_12 : f32 to vector<128x32xf32>
    %19 = arith.maximumf %17, %18 : vector<128x32xf32>
    %20 = arith.truncf %19 : vector<128x32xf32> to vector<128x32xbf16>
    %c0_13 = arith.constant 0 : index
    %c0_14 = arith.constant 0 : index
    %21 = vector.load %arg6[%c0_13, %c0_14] : memref<32x64xbf16, #tpu.memory_space<vmem>>, vector<32x64xbf16>
    %cst_15 = arith.constant dense<0.000000e+00> : vector<128x64xf32>
    %22 = tpu.matmul %20, %21, %cst_15 {dimension_numbers = #tpu.dot_dimension_numbers<[1], [0], [0], [1], [0, 0, 1, 1], [], []>} : vector<128x32xbf16>, vector<32x64xbf16>, vector<128x64xf32> -> vector<128x64xf32>
    %c0_16 = arith.constant 0 : index
    %c0_17 = arith.constant 0 : index
    %23 = vector.load %arg7[%c0_16, %c0_17] : memref<1x64xf32, #tpu.memory_space<vmem>>, vector<1x64xf32>
    %24 = vector.broadcast %23 : vector<1x64xf32> to vector<128x64xf32>
    %25 = arith.addf %22, %24 : vector<128x64xf32>
    %cst_18 = arith.constant 0.000000e+00 : f32
    %26 = vector.broadcast %cst_18 : f32 to vector<128x64xf32>
    %27 = arith.maximumf %25, %26 : vector<128x64xf32>
    %28 = vector.shape_cast %27 : vector<128x64xf32> to vector<1x128x64xf32>
    %cst_19 = arith.constant dense<0xFF800000> : vector<1x64xf32>
    %29 = vector.multi_reduction <maximumf>, %28, %cst_19 [1] : vector<1x128x64xf32> to vector<1x64xf32>
    %30 = arith.truncf %29 : vector<1x64xf32> to vector<1x64xbf16>
    %c0_20 = arith.constant 0 : index
    %c0_21 = arith.constant 0 : index
    %31 = vector.load %arg8[%c0_20, %c0_21] : memref<64x32xbf16, #tpu.memory_space<vmem>>, vector<64x32xbf16>
    %cst_22 = arith.constant dense<0.000000e+00> : vector<1x32xf32>
    %32 = tpu.matmul %30, %31, %cst_22 {dimension_numbers = #tpu.dot_dimension_numbers<[1], [0], [0], [1], [0, 0, 1, 1], [], []>} : vector<1x64xbf16>, vector<64x32xbf16>, vector<1x32xf32> -> vector<1x32xf32>
    %c0_23 = arith.constant 0 : index
    %c0_24 = arith.constant 0 : index
    %33 = vector.load %arg9[%c0_23, %c0_24] : memref<1x32xf32, #tpu.memory_space<vmem>>, vector<1x32xf32>
    %34 = arith.addf %32, %33 : vector<1x32xf32>
    %cst_25 = arith.constant 0.000000e+00 : f32
    %35 = vector.broadcast %cst_25 : f32 to vector<1x32xf32>
    %36 = arith.maximumf %34, %35 : vector<1x32xf32>
    %37 = arith.truncf %36 : vector<1x32xf32> to vector<1x32xbf16>
    %c0_26 = arith.constant 0 : index
    %c0_27 = arith.constant 0 : index
    %38 = vector.load %arg10[%c0_26, %c0_27] : memref<32x16xbf16, #tpu.memory_space<vmem>>, vector<32x16xbf16>
    %cst_28 = arith.constant dense<0.000000e+00> : vector<1x16xf32>
    %39 = tpu.matmul %37, %38, %cst_28 {dimension_numbers = #tpu.dot_dimension_numbers<[1], [0], [0], [1], [0, 0, 1, 1], [], []>} : vector<1x32xbf16>, vector<32x16xbf16>, vector<1x16xf32> -> vector<1x16xf32>
    %c0_29 = arith.constant 0 : index
    %c0_30 = arith.constant 0 : index
    %40 = vector.load %arg11[%c0_29, %c0_30] : memref<1x16xf32, #tpu.memory_space<vmem>>, vector<1x16xf32>
    %41 = arith.addf %39, %40 : vector<1x16xf32>
    %cst_31 = arith.constant 0.000000e+00 : f32
    %42 = vector.broadcast %cst_31 : f32 to vector<1x16xf32>
    %43 = arith.maximumf %41, %42 : vector<1x16xf32>
    %44 = arith.truncf %43 : vector<1x16xf32> to vector<1x16xbf16>
    %c0_32 = arith.constant 0 : index
    %c0_33 = arith.constant 0 : index
    %45 = vector.load %arg12[%c0_32, %c0_33] : memref<16x9xbf16, #tpu.memory_space<vmem>>, vector<16x9xbf16>
    %cst_34 = arith.constant dense<0.000000e+00> : vector<1x9xf32>
    %46 = tpu.matmul %44, %45, %cst_34 {dimension_numbers = #tpu.dot_dimension_numbers<[1], [0], [0], [1], [0, 0, 1, 1], [], []>} : vector<1x16xbf16>, vector<16x9xbf16>, vector<1x9xf32> -> vector<1x9xf32>
    %c0_35 = arith.constant 0 : index
    %c0_36 = arith.constant 0 : index
    %47 = vector.load %arg13[%c0_35, %c0_36] : memref<1x9xf32, #tpu.memory_space<vmem>>, vector<1x9xf32>
    %48 = arith.addf %46, %47 : vector<1x9xf32>
    %49 = vector.extract_strided_slice %48 {offsets = [0, 0], sizes = [1, 3], strides = [1, 1]} : vector<1x9xf32> to vector<1x3xf32>
    %50 = vector.extract_strided_slice %48 {offsets = [0, 3], sizes = [1, 3], strides = [1, 1]} : vector<1x9xf32> to vector<1x3xf32>
    %51 = vector.extract_strided_slice %48 {offsets = [0, 6], sizes = [1, 3], strides = [1, 1]} : vector<1x9xf32> to vector<1x3xf32>
    %52 = tpu.concatenate %49, %50, %51 in 0 : vector<1x3xf32>, vector<1x3xf32>, vector<1x3xf32> -> vector<3x3xf32>
    %53 = vector.shape_cast %2 : vector<1x128x3xf32> to vector<128x3xf32>
    %cst_37 = arith.constant dense<0.000000e+00> : vector<128x3xf32>
    %54 = tpu.matmul %53, %52, %cst_37 {dimension_numbers = #tpu.dot_dimension_numbers<[1], [0], [0], [1], [0, 0, 1, 1], [], []>} : vector<128x3xf32>, vector<3x3xf32>, vector<128x3xf32> -> vector<128x3xf32>
    %55 = arith.truncf %54 : vector<128x3xf32> to vector<128x3xbf16>
    %c0_38 = arith.constant 0 : index
    %c0_39 = arith.constant 0 : index
    %56 = vector.load %arg14[%c0_38, %c0_39] : memref<3x16xbf16, #tpu.memory_space<vmem>>, vector<3x16xbf16>
    %cst_40 = arith.constant dense<0.000000e+00> : vector<128x16xf32>
    %57 = tpu.matmul %55, %56, %cst_40 {dimension_numbers = #tpu.dot_dimension_numbers<[1], [0], [0], [1], [0, 0, 1, 1], [], []>} : vector<128x3xbf16>, vector<3x16xbf16>, vector<128x16xf32> -> vector<128x16xf32>
    %c0_41 = arith.constant 0 : index
    %c0_42 = arith.constant 0 : index
    %58 = vector.load %arg15[%c0_41, %c0_42] : memref<1x16xf32, #tpu.memory_space<vmem>>, vector<1x16xf32>
    %59 = vector.broadcast %58 : vector<1x16xf32> to vector<128x16xf32>
    %60 = arith.addf %57, %59 : vector<128x16xf32>
    %cst_43 = arith.constant 0.000000e+00 : f32
    %61 = vector.broadcast %cst_43 : f32 to vector<128x16xf32>
    %62 = arith.maximumf %60, %61 : vector<128x16xf32>
    %63 = arith.truncf %62 : vector<128x16xf32> to vector<128x16xbf16>
    %c0_44 = arith.constant 0 : index
    %c0_45 = arith.constant 0 : index
    %64 = vector.load %arg16[%c0_44, %c0_45] : memref<16x32xbf16, #tpu.memory_space<vmem>>, vector<16x32xbf16>
    %cst_46 = arith.constant dense<0.000000e+00> : vector<128x32xf32>
    %65 = tpu.matmul %63, %64, %cst_46 {dimension_numbers = #tpu.dot_dimension_numbers<[1], [0], [0], [1], [0, 0, 1, 1], [], []>} : vector<128x16xbf16>, vector<16x32xbf16>, vector<128x32xf32> -> vector<128x32xf32>
    %c0_47 = arith.constant 0 : index
    %c0_48 = arith.constant 0 : index
    %66 = vector.load %arg17[%c0_47, %c0_48] : memref<1x32xf32, #tpu.memory_space<vmem>>, vector<1x32xf32>
    %67 = vector.broadcast %66 : vector<1x32xf32> to vector<128x32xf32>
    %68 = arith.addf %65, %67 : vector<128x32xf32>
    %cst_49 = arith.constant 0.000000e+00 : f32
    %69 = vector.broadcast %cst_49 : f32 to vector<128x32xf32>
    %70 = arith.maximumf %68, %69 : vector<128x32xf32>
    %71 = arith.truncf %70 : vector<128x32xf32> to vector<128x32xbf16>
    %c0_50 = arith.constant 0 : index
    %c0_51 = arith.constant 0 : index
    %72 = vector.load %arg18[%c0_50, %c0_51] : memref<32x64xbf16, #tpu.memory_space<vmem>>, vector<32x64xbf16>
    %cst_52 = arith.constant dense<0.000000e+00> : vector<128x64xf32>
    %73 = tpu.matmul %71, %72, %cst_52 {dimension_numbers = #tpu.dot_dimension_numbers<[1], [0], [0], [1], [0, 0, 1, 1], [], []>} : vector<128x32xbf16>, vector<32x64xbf16>, vector<128x64xf32> -> vector<128x64xf32>
    %c0_53 = arith.constant 0 : index
    %c0_54 = arith.constant 0 : index
    %74 = vector.load %arg19[%c0_53, %c0_54] : memref<1x64xf32, #tpu.memory_space<vmem>>, vector<1x64xf32>
    %75 = vector.broadcast %74 : vector<1x64xf32> to vector<128x64xf32>
    %76 = arith.addf %73, %75 : vector<128x64xf32>
    %77 = vector.shape_cast %76 : vector<128x64xf32> to vector<1x128x64xf32>
    %cst_55 = arith.constant dense<0xFF800000> : vector<1x64xf32>
    %78 = vector.multi_reduction <maximumf>, %77, %cst_55 [1] : vector<1x128x64xf32> to vector<1x64xf32>
    %79 = vector.shape_cast %78 : vector<1x64xf32> to vector<1x64x1xf32>
    %80 = vector.shape_cast %79 : vector<1x64x1xf32> to vector<1x64x1xf32>
    %81 = vector.broadcast %80 : vector<1x64x1xf32> to vector<1x64x128xf32>
    %c0_56 = arith.constant 0 : index
    %c0_57 = arith.constant 0 : index
    %c0_58 = arith.constant 0 : index
    %82 = vector.load %arg20[%c0_56, %c0_57, %c0_58] : memref<1x80x128xf32, #tpu.memory_space<vmem>>, vector<1x64x128xf32>
    tpu.vector_store %arg20[%c0_56, %c0_57, %c0_58], %81 {strides = array<i32>} : memref<1x80x128xf32, #tpu.memory_space<vmem>>, vector<1x64x128xf32>,
    %83 = tpu.transpose %62, [1, 0] : vector<128x16xf32> -> vector<16x128xf32>
    %c0_59 = arith.constant 0 : index
    %c64 = arith.constant 64 : index
    %c0_60 = arith.constant 0 : index
    %84 = vector.load %arg20[%c0_59, %c64, %c0_60] : memref<1x80x128xf32, #tpu.memory_space<vmem>>, vector<1x16x128xf32>
    %85 = vector.shape_cast %84 : vector<1x16x128xf32> to vector<16x128xf32>
    %86 = vector.shape_cast %83 : vector<16x128xf32> to vector<1x16x128xf32>
    tpu.vector_store %arg20[%c0_59, %c64, %c0_60], %86 {strides = array<i32>} : memref<1x80x128xf32, #tpu.memory_space<vmem>>, vector<1x16x128xf32>,
    return
  }
  func.func @transform_0(%arg0: i32) -> (i32, i32, i32) {
    %c0_i32 = arith.constant 0 : i32
    %c0_i32_0 = arith.constant 0 : i32
    %c0_i32_1 = arith.constant 0 : i32
    return %arg0, %c0_i32, %c0_i32_0 : i32, i32, i32
  }
  func.func @transform_1(%arg0: i32) -> (i32, i32) {
    %c0_i32 = arith.constant 0 : i32
    %c0_i32_0 = arith.constant 0 : i32
    %c0_i32_1 = arith.constant 0 : i32
    return %c0_i32, %c0_i32_0 : i32, i32
  }
  func.func @transform_2(%arg0: i32) -> (i32, i32) {
    %c0_i32 = arith.constant 0 : i32
    %c0_i32_0 = arith.constant 0 : i32
    %c0_i32_1 = arith.constant 0 : i32
    return %c0_i32, %c0_i32_0 : i32, i32
  }
  func.func @transform_3(%arg0: i32) -> (i32, i32) {
    %c0_i32 = arith.constant 0 : i32
    %c0_i32_0 = arith.constant 0 : i32
    %c0_i32_1 = arith.constant 0 : i32
    return %c0_i32, %c0_i32_0 : i32, i32
  }
  func.func @transform_4(%arg0: i32) -> (i32, i32) {
    %c0_i32 = arith.constant 0 : i32
    %c0_i32_0 = arith.constant 0 : i32
    %c0_i32_1 = arith.constant 0 : i32
    return %c0_i32, %c0_i32_0 : i32, i32
  }
  func.func @transform_5(%arg0: i32) -> (i32, i32) {
    %c0_i32 = arith.constant 0 : i32
    %c0_i32_0 = arith.constant 0 : i32
    %c0_i32_1 = arith.constant 0 : i32
    return %c0_i32, %c0_i32_0 : i32, i32
  }
  func.func @transform_6(%arg0: i32) -> (i32, i32) {
    %c0_i32 = arith.constant 0 : i32
    %c0_i32_0 = arith.constant 0 : i32
    %c0_i32_1 = arith.constant 0 : i32
    return %c0_i32, %c0_i32_0 : i32, i32
  }
  func.func @transform_7(%arg0: i32) -> (i32, i32) {
    %c0_i32 = arith.constant 0 : i32
    %c0_i32_0 = arith.constant 0 : i32
    %c0_i32_1 = arith.constant 0 : i32
    return %c0_i32, %c0_i32_0 : i32, i32
  }
  func.func @transform_8(%arg0: i32) -> (i32, i32) {
    %c0_i32 = arith.constant 0 : i32
    %c0_i32_0 = arith.constant 0 : i32
    %c0_i32_1 = arith.constant 0 : i32
    return %c0_i32, %c0_i32_0 : i32, i32
  }
  func.func @transform_9(%arg0: i32) -> (i32, i32) {
    %c0_i32 = arith.constant 0 : i32
    %c0_i32_0 = arith.constant 0 : i32
    %c0_i32_1 = arith.constant 0 : i32
    return %c0_i32, %c0_i32_0 : i32, i32
  }
  func.func @transform_10(%arg0: i32) -> (i32, i32) {
    %c0_i32 = arith.constant 0 : i32
    %c0_i32_0 = arith.constant 0 : i32
    %c0_i32_1 = arith.constant 0 : i32
    return %c0_i32, %c0_i32_0 : i32, i32
  }
  func.func @transform_11(%arg0: i32) -> (i32, i32) {
    %c0_i32 = arith.constant 0 : i32
    %c0_i32_0 = arith.constant 0 : i32
    %c0_i32_1 = arith.constant 0 : i32
    return %c0_i32, %c0_i32_0 : i32, i32
  }
  func.func @transform_12(%arg0: i32) -> (i32, i32) {
    %c0_i32 = arith.constant 0 : i32
    %c0_i32_0 = arith.constant 0 : i32
    %c0_i32_1 = arith.constant 0 : i32
    return %c0_i32, %c0_i32_0 : i32, i32
  }
  func.func @transform_13(%arg0: i32) -> (i32, i32) {
    %c0_i32 = arith.constant 0 : i32
    %c0_i32_0 = arith.constant 0 : i32
    %c0_i32_1 = arith.constant 0 : i32
    return %c0_i32, %c0_i32_0 : i32, i32
  }
  func.func @transform_14(%arg0: i32) -> (i32, i32) {
    %c0_i32 = arith.constant 0 : i32
    %c0_i32_0 = arith.constant 0 : i32
    %c0_i32_1 = arith.constant 0 : i32
    return %c0_i32, %c0_i32_0 : i32, i32
  }
  func.func @transform_15(%arg0: i32) -> (i32, i32) {
    %c0_i32 = arith.constant 0 : i32
    %c0_i32_0 = arith.constant 0 : i32
    %c0_i32_1 = arith.constant 0 : i32
    return %c0_i32, %c0_i32_0 : i32, i32
  }
  func.func @transform_16(%arg0: i32) -> (i32, i32) {
    %c0_i32 = arith.constant 0 : i32
    %c0_i32_0 = arith.constant 0 : i32
    %c0_i32_1 = arith.constant 0 : i32
    return %c0_i32, %c0_i32_0 : i32, i32
  }
  func.func @transform_17(%arg0: i32) -> (i32, i32) {
    %c0_i32 = arith.constant 0 : i32
    %c0_i32_0 = arith.constant 0 : i32
    %c0_i32_1 = arith.constant 0 : i32
    return %c0_i32, %c0_i32_0 : i32, i32
  }
  func.func @transform_18(%arg0: i32) -> (i32, i32) {
    %c0_i32 = arith.constant 0 : i32
    %c0_i32_0 = arith.constant 0 : i32
    %c0_i32_1 = arith.constant 0 : i32
    return %c0_i32, %c0_i32_0 : i32, i32
  }
  func.func @transform_19(%arg0: i32) -> (i32, i32, i32) {
    %c0_i32 = arith.constant 0 : i32
    %c0_i32_0 = arith.constant 0 : i32
    %c0_i32_1 = arith.constant 0 : i32
    return %arg0, %c0_i32, %c0_i32_0 : i32, i32, i32
  }
}

</mosaic_0001>

<bundles_post_ra>
// kernel: tpu_custom_call.1
= control target key start
LH: loop header
LB: loop body
LE: loop exit
PB: predicated region body
PF: predicated region fallthrough
CT: control target
= control target key end

     0   :  { %s2741_s0 = inlined_call_operand.vmem [shape: bf16[2,3,128], index: 0, kind: input, shape index: {}]   ;;  %s2742_s1 = inlined_call_operand.vmem [shape: bf16[3,16], index: 1, kind: input, shape index: {}]   ;;  %s2743_s2 = inlined_call_operand.vmem [shape: f32[1,16], index: 2, kind: input, shape index: {}]   ;;  %s2744_s3 = inlined_call_operand.vmem [shape: bf16[16,32], index: 3, kind: input, shape index: {}]   ;;  %s2745_s4 = inlined_call_operand.vmem [shape: f32[1,32], index: 4, kind: input, shape index: {}]   ;;  %s2746_s5 = inlined_call_operand.vmem [shape: bf16[32,64], index: 5, kind: input, shape index: {}]   ;;  %s2747_s6 = inlined_call_operand.vmem [shape: f32[1,64], index: 6, kind: input, shape index: {}]   ;;  %s2748_s7 = inlined_call_operand.vmem [shape: bf16[64,32], index: 7, kind: input, shape index: {}]   ;;  %s2749_s8 = inlined_call_operand.hbm [shape: f32[1,32], index: 8, kind: input, shape index: {}]   ;;  %s2750_s9 = inlined_call_operand.vmem [shape: bf16[32,16], index: 9, kind: input, shape index: {}]   ;;  %s2751_s10 = inlined_call_operand.vmem [shape: f32[1,16], index: 10, kind: input, shape index: {}]   ;;  %s2752_s11 = inlined_call_operand.vmem [shape: bf16[16,9], index: 11, kind: input, shape index: {}]   ;;  %s2753_s12 = inlined_call_operand.vmem [shape: f32[1,9], index: 12, kind: input, shape index: {}]   ;;  %s2754_s13 = inlined_call_operand.vmem [shape: bf16[3,16], index: 13, kind: input, shape index: {}]   ;;  %s2755_s14 = inlined_call_operand.vmem [shape: f32[1,16], index: 14, kind: input, shape index: {}]   ;;  %s2756_s15 = inlined_call_operand.vmem [shape: bf16[16,32], index: 15, kind: input, shape index: {}]   ;;  %s2757_s16 = inlined_call_operand.vmem [shape: f32[1,32], index: 16, kind: input, shape index: {}]   ;;  %s2758_s17 = inlined_call_operand.vmem [shape: bf16[32,64], index: 17, kind: input, shape index: {}]   ;;  %s2759_s18 = inlined_call_operand.vmem [shape: f32[1,64], index: 18, kind: input, shape index: {}]   ;;  %s2760_s19 = inlined_call_operand.hbm [shape: f32[2,80,128], index: 19, kind: output, shape index: {}]  }
   0x1   :  { %2765 = sst [smem:[#allocation12_spill]] %s2741_s0 }
   0x2   :  { %2766 = sst [smem:[#allocation13_spill]] %s2742_s1 }
   0x3   :  { %2767 = sst [smem:[#allocation14_spill]] %s2743_s2 }
   0x4   :  { %2768 = sst [smem:[#allocation15_spill]] %s2744_s3 }
   0x5   :  { %2769 = sst [smem:[#allocation16_spill]] %s2745_s4 }
   0x6   :  { %2770 = sst [smem:[#allocation17_spill]] %s2749_s8 }
   0x7   :  { %24 = vsyncpa [#allocation3], 0 }
   0x8   :  { %25 = vsyncpa [#allocation4], 0 }
   0x9   :  { %27 = vsyncpa [#allocation4 + $0x1], 0  ;;  %s2220_s0 = smov 0   ;;  %s2222_s30 = smov 0  }
   0xa   :  { %s2224_s20 = smov 0   ;;  %s2226_s21 = smov 0  }
   0xb LB: > { %2771 = sst [smem:[#allocation8_spill]] %s2108_s20  ;;  %s2241_s1 = sadd.s32 4294967295, %s2112_s21   ;;  %s2112_s21 = sphi %s2226_s21, %s2784_s21   ;;  %s2108_s20 = sphi %s2224_s20, %s2786_s20   ;;  %s2104_s30 = sphi %s2222_s30, %s2788_s30   ;;  %s2100_s0 = sphi %s2220_s0, %s2787_s0  }
   0xc   : > { %s1796_s22 = sadd.s32 4294967294, %s2112_s21   ;;  %s2245_s2 = sadd.s32 1, %s2112_s21  }
   0xd   : > { %2772 = sst [smem:[#allocation9_spill]] %s2245_s2  ;;  %s444_s23 = sadd.s32 1, %s2108_s20 }
   0xe   : > { %s441_s24 = ssub.s32 %s2112_s21, %s2245_s2  ;;  %p454_p0 = scmp.ne.s32.totalorder %s2108_s20, %s2104_s30 }
   0xf   : > { %p442_p1 = scmp.eq.s32.totalorder %s441_s24, 0  ;;  %p455_p2 = scmp.eq.s32.totalorder %s2241_s1, 1 }
  0x10   : > { %p460_p3 = scmp.ne.s32.totalorder %s2104_s30, %s2100_s0  ;;  %p461_p4 = scmp.eq.s32.totalorder %s1796_s22, 1 }
  0x11   : > { %s2256_s25 = scalar_select %p442_p1, %s2108_s20, %s444_s23  }
  0x12   : > { %p2258_p5 = por %p455_p2, %p454_p0  ;;  %p2262_p6 = por %p461_p4, %p460_p3 }
  0x13   : > { %2773 = sst [smem:[#allocation10_spill]] %s2256_s25  ;;  %p1797_p7 = scmp.ge.s32.totalorder %s2112_s21, 1 }
  0x14   : > { %s2775_s26 = scalar_select %p2262_p6, 1, 0 }
  0x15   : > { %p468_p8 = scmp.lt.s32.totalorder %s2112_s21, 3  ;;  %p1959_p9 = scmp.eq.s32.totalorder %s2241_s1, 0 }
  0x16   : > { %2776 = sst [smem:[#allocation11_spill]] %s2775_s26  ;;  %s2114_s22 = smov [#allocation2]  }
  0x17   : > { %p469_p10 = pnand %p1797_p7, %p468_p8  ;;  %s2777_s8 = sld [smem:[#allocation17_spill]] }
  0x18   : > { %s503_s23 = sshll.u32 %s2114_s22, 4  ;;  %s504_s23 = int_to_ptr.vmem [resolvable:$true] %s503_s23 }
  0x19   : > { %p1951_p11 = pneg %p469_p10 }
  0x1a   : > { %553 = sbr.rel (%p469_p10) target bundleno = 2263 (0x8d7), region = 96 }
  0x1b   : > { %p1952_p12 = pnand %p1959_p9, %p1951_p11 }
  0x1d   : > { %s501_s29 = sshll.u32 %s2777_s8, 4  ;;  %s502_s29 = int_to_ptr.hbm [resolvable:$true] %s501_s29 }
  0x1e   : > { %1954 = dma.hbm_to_vmem [thread:$0]  (!%p1952_p12), %s502_s29, 16, %s504_s23, [#allocation3]  }
  0x1f   : > { %2091 = dma.done.wait (%p1959_p9), [#allocation3], 16  }
  0x20   : > { %2093 = vsyncadd (%p1959_p9), [#allocation3], 4294967280  ;;  %p609_p13 = scmp.lt.s32.totalorder %s2241_s1, 1  ;;  %s2778_s26 = sld [smem:[#allocation12_spill]]  ;;  %vm686_vm0 = vcmask 1040384   ;;  %vm687_vm1 = vcmask 1041408  }
  0x21   : > { %s2779_s8 = sld [smem:[#allocation13_spill]]  ;;  %v2115_v3 = vmov 65535   ;;  %vm661_vm2 = vcmask 23552   ;;  %vm778_vm3 = vcmask 130048   ;;  %vm896_vm4 = vcmask 261120   ;;  %s2116_s22 = smov 122  }
  0x22   : > { %s610_s24 = scalar_select %p609_p13, %s2241_s1, 1  ;;  %v688_v4 = vsel %vm686_vm0, 4294967295, %v2115_v3  ;;  %vm986_vm5 = vcmask 523264   ;;  %vm1195_vm6 = vcmask 1042432  }
  0x23   : > { %v2282_v5 = vsel %vm687_vm1, %v688_v4, 0  ;;  %s2780_s2 = sld [smem:[#allocation15_spill]] }
  0x24   : > { %s1802_s25 = sshll.u32 %s610_s24, 1  ;;  %s2781_s29 = sld [smem:[#allocation14_spill]] }
  0x25   : > { %s2782_s4 = sld [smem:[#allocation16_spill]]  ;;  %s1944_s24 = smul.u32 80, %s2241_s1 }
  0x26   : > { %s612_s27 = scalar_lea.vmem %s2778_s26, %s1802_s25  ;;  %s606_s26 = sand.u32 1, %s2104_s30  }
  0x27   : > { %v614_v0 = vld [vmem:[%s612_s27] sm:$0x3] }
  0x28   : > { %v615_v1 = vunpack.c.l.bf16 %v614_v0  ;;  %v656_v2 = vld [vmem:[%s2779_s8] sm:$0x3]  ;;  %s2117_s8 = smov 125  }
  0x29   : > { %v691_v6 = vand.u32 %v2282_v5, %v656_v2  ;;  %v1926_v29 = vld [vmem:[%s2780_s2] sm:$0xff]  ;;  %s1707_s2 = scalar_lea.sflag [#allocation4], %s606_s26 }
  0x2a   : > { %616 = vxpose.xlu0.b32.start.end [1/1] (short) %v615_v1, 128  ;;  %810 = vmatpush.bf16.msra.mxu1 %v1926_v29  ;;  %v2347_v33 = vld [vmem:[%s2781_s29] ss:$0 sm:$0xff]  ;;  %s1943_s29 = smul.u32 80, %s606_s26 }
  0x2b   : > { %700 = vmatpush.bf16.msra.mxu0 %v691_v6  ;;  %1939 = vmatpush.bf16.msra.mxu3 %v691_v6 }
  0x2c   : > { %s2665_s23 = scalar_lea.vmem [#allocation5], %s1943_s29 }
  0x2f   : > { %1940 = vmatpush.bf16.msrb.mxu3 %v1926_v29 }
  0xce   : > { %v2285_v7 = vpop.trf.xlu0 }
  0xd6   : > { %v2287_v8 = vpop.trf.xlu0 }
  0xd7   : > { %v648_v9 = vpack.c.bf16 %v2287_v8, %v2285_v7 }
  0xd9   : > { %1803 = vmatmul.msk.bf16.vlgmr.msra.gmra.mxu0 %vm661_vm2, %v648_v9 }
  0xde   : > { %v2292_v10 = vpop.trf.xlu0 }
  0xe6   : > { %v2294_v11 = vpop.trf.xlu0 }
  0xe7   : > { %v649_v12 = vpack.c.bf16 %v2294_v11, %v2292_v10 }
  0xe9   : > { %1804 = vmatmul.msk.bf16.gmra.mxu0 %vm661_vm2, %v649_v12 }
  0xee   : > { %v2299_v13 = vpop.trf.xlu0 }
  0xf6   : > { %v2301_v14 = vpop.trf.xlu0 }
  0xf7   : > { %v650_v15 = vpack.c.bf16 %v2301_v14, %v2299_v13 }
  0xf9   : > { %1805 = vmatmul.msk.bf16.gmra.mxu0 %vm661_vm2, %v650_v15 }
  0xfe   : > { %v2306_v16 = vpop.trf.xlu0 }
 0x106   : > { %v2308_v17 = vpop.trf.xlu0 }
 0x107   : > { %v651_v18 = vpack.c.bf16 %v2308_v17, %v2306_v16 }
 0x109   : > { %1806 = vmatmul.msk.bf16.gmra.mxu0 %vm661_vm2, %v651_v18 }
 0x10e   : > { %v2313_v19 = vpop.trf.xlu0 }
 0x116   : > { %v2315_v20 = vpop.trf.xlu0 }
 0x117   : > { %v652_v21 = vpack.c.bf16 %v2315_v20, %v2313_v19 }
 0x119   : > { %1807 = vmatmul.msk.bf16.gmra.mxu0 %vm661_vm2, %v652_v21 }
 0x11e   : > { %v2320_v22 = vpop.trf.xlu0 }
 0x126   : > { %v2322_v23 = vpop.trf.xlu0 }
 0x127   : > { %v653_v24 = vpack.c.bf16 %v2322_v23, %v2320_v22 }
 0x129   : > { %1808 = vmatmul.msk.bf16.gmra.mxu0 %vm661_vm2, %v653_v24 }
 0x12e   : > { %v2327_v25 = vpop.trf.xlu0 }
 0x136   : > { %v2329_v26 = vpop.trf.xlu0 }
 0x137   : > { %v654_v27 = vpack.c.bf16 %v2329_v26, %v2327_v25 }
 0x139   : > { %1809 = vmatmul.msk.bf16.gmra.mxu0 %vm661_vm2, %v654_v27 }
 0x13e   : > { %v2334_v28 = vpop.trf.xlu0 }
 0x146   : > { %v2339_v30 = vpop.trf.xlu0 }
 0x147   : > { %v655_v31 = vpack.c.bf16 %v2339_v30, %v2334_v28 }
 0x149   : > { %1810 = vmatmul.msk.bf16.vlgmr.msra.gmra.mxu3 %vm661_vm2, %v655_v31 }
 0x156   : > { %v702_v32 = vpop.f32.mrf.mxu0 }
 0x157   : > { %v703_v34 = vadd.f32 %v2347_v33, %v702_v32 }
 0x159   : > { %v742_v37 = vmax.f32 %v703_v34, 0.0 }
 0x15e   : > { %v704_v35 = vpop.f32.mrf.mxu0 }
 0x15f   : > { %v705_v36 = vadd.f32 %v2347_v33, %v704_v35 }
 0x161   : > { %v743_v38 = vmax.f32 %v705_v36, 0.0  ;;  %v1928_v36 = vld [vmem:[%s2746_s5 + $0x8] sm:$0xff] }
 0x162   : > { %927 = vmatpush.bf16.msra.mxu2 %v1928_v36  ;;  %1941 = vmatpush.bf16.msra.mxu3 %v1928_v36 }
 0x163   : > { %v758_v39 = vpack.c.bf16 %v743_v38, %v742_v37  ;;  %v1927_v38 = vld [vmem:[%s2746_s5] sm:$0xff] }
 0x165   : > { %1815 = vmatmul.msk.bf16.vlgmr.msra.gmra.mxu1 %vm778_vm3, %v758_v39 }
 0x166   : > { %v707_v40 = vpop.f32.mrf.mxu0  ;;  %928 = vmatpush.bf16.msra.mxu2 %v1927_v38  ;;  %1942 = vmatpush.bf16.msra.mxu3 %v1927_v38 }
 0x167   : > { %v708_v41 = vadd.f32 %v2347_v33, %v707_v40 }
 0x169   : > { %v744_v44 = vmax.f32 %v708_v41, 0.0 }
 0x16e   : > { %v709_v42 = vpop.f32.mrf.mxu0 }
 0x16f   : > { %v710_v43 = vadd.f32 %v2347_v33, %v709_v42 }
 0x171   : > { %v745_v45 = vmax.f32 %v710_v43, 0.0 }
 0x173   : > { %v759_v46 = vpack.c.bf16 %v745_v45, %v744_v44 }
 0x175   : > { %1816 = vmatmul.msk.bf16.gmra.mxu1 %vm778_vm3, %v759_v46  ;;  %v2011_v46 = vld [vmem:[%s2782_s4] ss:$0 sm:$0xff] }
 0x176   : > { %v712_v47 = vpop.f32.mrf.mxu0 }
 0x177   : > { %v713_v48 = vadd.f32 %v2347_v33, %v712_v47 }
 0x179   : > { %v746_v51 = vmax.f32 %v713_v48, 0.0 }
 0x17e   : > { %v714_v49 = vpop.f32.mrf.mxu0 }
 0x17f   : > { %v715_v50 = vadd.f32 %v2347_v33, %v714_v49 }
 0x181   : > { %v747_v52 = vmax.f32 %v715_v50, 0.0 }
 0x183   : > { %v760_v53 = vpack.c.bf16 %v747_v52, %v746_v51 }
 0x185   : > { %1817 = vmatmul.msk.bf16.gmra.mxu1 %vm778_vm3, %v760_v53 }
 0x186   : > { %v717_v54 = vpop.f32.mrf.mxu0 }
 0x187   : > { %v718_v55 = vadd.f32 %v2347_v33, %v717_v54 }
 0x189   : > { %v748_v58 = vmax.f32 %v718_v55, 0.0 }
 0x18e   : > { %v719_v56 = vpop.f32.mrf.mxu0 }
 0x18f   : > { %v720_v57 = vadd.f32 %v2347_v33, %v719_v56 }
 0x191   : > { %v749_v59 = vmax.f32 %v720_v57, 0.0 }
 0x193   : > { %v761_v60 = vpack.c.bf16 %v749_v59, %v748_v58 }
 0x195   : > { %1818 = vmatmul.msk.bf16.gmra.mxu1 %vm778_vm3, %v761_v60 }
 0x196   : > { %v722_v61 = vpop.f32.mrf.mxu0 }
 0x197   : > { %v723_v62 = vadd.f32 %v2347_v33, %v722_v61 }
 0x199   : > { %v750_v1 = vmax.f32 %v723_v62, 0.0 }
 0x19e   : > { %v724_v63 = vpop.f32.mrf.mxu0 }
 0x19f   : > { %v725_v0 = vadd.f32 %v2347_v33, %v724_v63 }
 0x1a1   : > { %v751_v2 = vmax.f32 %v725_v0, 0.0 }
 0x1a3   : > { %v762_v3 = vpack.c.bf16 %v751_v2, %v750_v1 }
 0x1a5   : > { %1819 = vmatmul.msk.bf16.gmra.mxu1 %vm778_vm3, %v762_v3 }
 0x1a6   : > { %v727_v4 = vpop.f32.mrf.mxu0 }
 0x1a7   : > { %v728_v6 = vadd.f32 %v2347_v33, %v727_v4 }
 0x1a9   : > { %v752_v15 = vmax.f32 %v728_v6, 0.0 }
 0x1ae   : > { %v729_v9 = vpop.f32.mrf.mxu0 }
 0x1af   : > { %v730_v12 = vadd.f32 %v2347_v33, %v729_v9 }
 0x1b1   : > { %v753_v18 = vmax.f32 %v730_v12, 0.0 }
 0x1b3   : > { %v763_v21 = vpack.c.bf16 %v753_v18, %v752_v15 }
 0x1b5   : > { %1820 = vmatmul.msk.bf16.gmra.mxu1 %vm778_vm3, %v763_v21 }
 0x1b6   : > { %v732_v24 = vpop.f32.mrf.mxu0 }
 0x1b7   : > { %v733_v27 = vadd.f32 %v2347_v33, %v732_v24 }
 0x1b9   : > { %v754_v32 = vmax.f32 %v733_v27, 0.0 }
 0x1be   : > { %v734_v29 = vpop.f32.mrf.mxu0 }
 0x1bf   : > { %v735_v31 = vadd.f32 %v2347_v33, %v734_v29 }
 0x1c1   : > { %v755_v34 = vmax.f32 %v735_v31, 0.0 }
 0x1c3   : > { %v764_v35 = vpack.c.bf16 %v755_v34, %v754_v32 }
 0x1c5   : > { %1821 = vmatmul.msk.bf16.gmra.mxu1 %vm778_vm3, %v764_v35 }
 0x1cc   : > { %v737_v37 = vpop.f32.mrf.mxu3 }
 0x1cd   : > { %v738_v39 = vadd.f32 %v2347_v33, %v737_v37 }
 0x1cf   : > { %v756_v42 = vmax.f32 %v738_v39, 0.0 }
 0x1d4   : > { %v739_v40 = vpop.f32.mrf.mxu3 }
 0x1d5   : > { %v740_v41 = vadd.f32 %v2347_v33, %v739_v40 }
 0x1d7   : > { %v757_v43 = vmax.f32 %v740_v41, 0.0 }
 0x1d9   : > { %v765_v44 = vpack.c.bf16 %v757_v43, %v756_v42 }
 0x1db   : > { %1822 = vmatmul.msk.bf16.vlgmr.msrb.gmra.mxu3 %vm778_vm3, %v765_v44 }
 0x1e2   : > { %v812_v45 = vpop.f32.mrf.mxu1 }
 0x1e3   : > { %v813_v47 = vadd.f32 %v2011_v46, %v812_v45 }
 0x1e5   : > { %v852_v50 = vmax.f32 %v813_v47, 0.0 }
 0x1ea   : > { %v814_v48 = vpop.f32.mrf.mxu1 }
 0x1eb   : > { %v815_v49 = vadd.f32 %v2011_v46, %v814_v48 }
 0x1ed   : > { %v853_v51 = vmax.f32 %v815_v49, 0.0 }
 0x1ef   : > { %v868_v52 = vpack.c.bf16 %v853_v51, %v852_v50 }
 0x1f1   : > { %1831 = vmatmul.msk.bf16.vlgmr.msra.gmra.mxu2 %vm896_vm4, %v868_v52 }
 0x1f2   : > { %v817_v33 = vpop.f32.mrf.mxu1 }
 0x1f3   : > { %v818_v53 = vadd.f32 %v2011_v46, %v817_v33 }
 0x1f5   : > { %v854_v56 = vmax.f32 %v818_v53, 0.0 }
 0x1fa   : > { %v819_v54 = vpop.f32.mrf.mxu1 }
 0x1fb   : > { %v820_v55 = vadd.f32 %v2011_v46, %v819_v54 }
 0x1fd   : > { %v855_v57 = vmax.f32 %v820_v55, 0.0 }
 0x1ff   : > { %v869_v58 = vpack.c.bf16 %v855_v57, %v854_v56 }
 0x201   : > { %1832 = vmatmul.msk.bf16.gmra.mxu2 %vm896_vm4, %v869_v58 }
 0x202   : > { %v822_v59 = vpop.f32.mrf.mxu1 }
 0x203   : > { %v823_v60 = vadd.f32 %v2011_v46, %v822_v59  ;;  %v2393_v59 = vld [vmem:[%s2747_s6] ss:$0 sm:$0xff] }
 0x205   : > { %v856_v63 = vmax.f32 %v823_v60, 0.0 }
 0x20a   : > { %v824_v61 = vpop.f32.mrf.mxu1 }
 0x20b   : > { %v825_v62 = vadd.f32 %v2011_v46, %v824_v61 }
 0x20d   : > { %v857_v0 = vmax.f32 %v825_v62, 0.0 }
 0x20f   : > { %v870_v1 = vpack.c.bf16 %v857_v0, %v856_v63 }
 0x211   : > { %1833 = vmatmul.msk.bf16.gmra.mxu2 %vm896_vm4, %v870_v1 }
 0x212   : > { %v827_v2 = vpop.f32.mrf.mxu1 }
 0x213   : > { %v828_v3 = vadd.f32 %v2011_v46, %v827_v2 }
 0x215   : > { %v858_v9 = vmax.f32 %v828_v3, 0.0 }
 0x21a   : > { %v829_v4 = vpop.f32.mrf.mxu1 }
 0x21b   : > { %v830_v6 = vadd.f32 %v2011_v46, %v829_v4 }
 0x21d   : > { %v859_v12 = vmax.f32 %v830_v6, 0.0 }
 0x21f   : > { %v871_v15 = vpack.c.bf16 %v859_v12, %v858_v9 }
 0x221   : > { %1834 = vmatmul.msk.bf16.gmra.mxu2 %vm896_vm4, %v871_v15 }
 0x222   : > { %v832_v18 = vpop.f32.mrf.mxu1 }
 0x223   : > { %v833_v21 = vadd.f32 %v2011_v46, %v832_v18 }
 0x225   : > { %v860_v29 = vmax.f32 %v833_v21, 0.0  ;;  %v1932_v21 = vld [vmem:[%s2748_s7 + $0x18] sm:$0xff] }
 0x226   : > { %1065 = vmatpush.bf16.msrb.mxu3 %v1932_v21 }
 0x22a   : > { %v834_v24 = vpop.f32.mrf.mxu1 }
 0x22b   : > { %v835_v27 = vadd.f32 %v2011_v46, %v834_v24 }
 0x22d   : > { %v861_v31 = vmax.f32 %v835_v27, 0.0  ;;  %v1931_v27 = vld [vmem:[%s2748_s7 + $0x10] sm:$0xff] }
 0x22e   : > { %1066 = vmatpush.bf16.msrb.mxu3 %v1931_v27 }
 0x22f   : > { %v872_v32 = vpack.c.bf16 %v861_v31, %v860_v29  ;;  %v1930_v29 = vld [vmem:[%s2748_s7 + $0x8] sm:$0xff]  ;;  %v1929_v31 = vld [vmem:[%s2748_s7] sm:$0xff] }
 0x231   : > { %1835 = vmatmul.msk.bf16.gmra.mxu2 %vm896_vm4, %v872_v32 }
 0x232   : > { %v837_v34 = vpop.f32.mrf.mxu1  ;;  %1067 = vmatpush.bf16.msrb.mxu3 %v1930_v29 }
 0x233   : > { %v838_v35 = vadd.f32 %v2011_v46, %v837_v34 }
 0x235   : > { %v862_v38 = vmax.f32 %v838_v35, 0.0 }
 0x236   : > { %1068 = vmatpush.bf16.msrb.mxu3 %v1929_v31 }
 0x23a   : > { %v839_v36 = vpop.f32.mrf.mxu1 }
 0x23b   : > { %v840_v37 = vadd.f32 %v2011_v46, %v839_v36 }
 0x23d   : > { %v863_v39 = vmax.f32 %v840_v37, 0.0 }
 0x23f   : > { %v873_v40 = vpack.c.bf16 %v863_v39, %v862_v38 }
 0x241   : > { %1836 = vmatmul.msk.bf16.gmra.mxu2 %vm896_vm4, %v873_v40 }
 0x242   : > { %v842_v41 = vpop.f32.mrf.mxu1 }
 0x243   : > { %v843_v42 = vadd.f32 %v2011_v46, %v842_v41 }
 0x245   : > { %v864_v45 = vmax.f32 %v843_v42, 0.0 }
 0x24a   : > { %v844_v43 = vpop.f32.mrf.mxu1 }
 0x24b   : > { %v845_v44 = vadd.f32 %v2011_v46, %v844_v43 }
 0x24d   : > { %v865_v47 = vmax.f32 %v845_v44, 0.0 }
 0x24f   : > { %v874_v48 = vpack.c.bf16 %v865_v47, %v864_v45 }
 0x251   : > { %1837 = vmatmul.msk.bf16.gmra.mxu2 %vm896_vm4, %v874_v48 }
 0x25e   : > { %v847_v49 = vpop.f32.mrf.mxu3 }
 0x25f   : > { %v848_v50 = vadd.f32 %v2011_v46, %v847_v49 }
 0x261   : > { %v866_v33 = vmax.f32 %v848_v50, 0.0 }
 0x266   : > { %v849_v51 = vpop.f32.mrf.mxu3 }
 0x267   : > { %v850_v52 = vadd.f32 %v2011_v46, %v849_v51 }
 0x269   : > { %v867_v53 = vmax.f32 %v850_v52, 0.0 }
 0x26b   : > { %v875_v54 = vpack.c.bf16 %v867_v53, %v866_v33 }
 0x26d   : > { %1838 = vmatmul.msk.bf16.vlgmr.msra.gmra.mxu3 %vm896_vm4, %v875_v54 }
 0x274   : > { %v930_v55 = vpop.f32.mrf.mxu2 }
 0x275   : > { %v931_v60 = vadd.f32 %v2393_v59, %v930_v55 }
 0x277   : > { %v970_v62 = vmax.f32 %v931_v60, 0.0 }
 0x279   : > { %v2398_v0 = vsel %vm986_vm5, %v970_v62, -inf }
 0x27c   : > { %v932_v56 = vpop.f32.mrf.mxu2 }
 0x27d   : > { %v933_v34 = vadd.f32 %v2393_v59, %v932_v56 }
 0x27f   : > { %v971_v48 = vmax.f32 %v933_v34, 0.0 }
 0x284   : > { %v935_v57 = vpop.f32.mrf.mxu2 }
 0x285   : > { %v936_v39 = vadd.f32 %v2393_v59, %v935_v57 }
 0x287   : > { %v972_v53 = vmax.f32 %v936_v39, 0.0 }
 0x28c   : > { %v937_v58 = vpop.f32.mrf.mxu2 }
 0x28d   : > { %v938_v40 = vadd.f32 %v2393_v59, %v937_v58 }
 0x28f   : > { %v973_v54 = vmax.f32 %v938_v40, 0.0 }
 0x294   : > { %v940_v61 = vpop.f32.mrf.mxu2 }
 0x295   : > { %v941_v46 = vadd.f32 %v2393_v59, %v940_v61  ;;  %v988_v61 = vsel %vm986_vm5, %v971_v48, -inf }
 0x297   : > { %v974_v63 = vmax.f32 %v941_v46, 0.0 }
 0x299   : > { %v2401_v1 = vsel %vm986_vm5, %v974_v63, -inf }
 0x29a   : > { %v992_v2 = vmax.f32 %v2398_v0, %v2401_v1  ;;  %v1934_v0 = vld [vmem:[%s2750_s9 + $0x8] sm:$0xff]  ;;  %v1933_v1 = vld [vmem:[%s2750_s9] sm:$0xff] }
 0x29b   : > { %1102 = vmatpush.bf16.msra.mxu3 %v1934_v0 }
 0x29c   : > { %v942_v3 = vpop.f32.mrf.mxu2 }
 0x29d   : > { %v943_v32 = vadd.f32 %v2393_v59, %v942_v3 }
 0x29f   : > { %v975_v43 = vmax.f32 %v943_v32, 0.0  ;;  %1103 = vmatpush.bf16.msra.mxu3 %v1933_v1 }
 0x2a1   : > { %v993_v56 = vsel %vm986_vm5, %v975_v43, -inf }
 0x2a4   : > { %v945_v4 = vpop.f32.mrf.mxu2 }
 0x2a5   : > { %v946_v35 = vadd.f32 %v2393_v59, %v945_v4 }
 0x2a7   : > { %v976_v49 = vmax.f32 %v946_v35, 0.0 }
 0x2a9   : > { %v995_v62 = vsel %vm986_vm5, %v976_v49, -inf }
 0x2ac   : > { %v947_v6 = vpop.f32.mrf.mxu2 }
 0x2ad   : > { %v948_v37 = vadd.f32 %v2393_v59, %v947_v6  ;;  %v989_v6 = vsel %vm986_vm5, %v972_v53, -inf }
 0x2ae   : > { %v996_v31 = vmax.f32 %v989_v6, %v995_v62  ;;  %v1080_v62 = vld [vmem:[%s2751_s10] sm:$0x1] }
 0x2af   : > { %v977_v50 = vmax.f32 %v948_v37, 0.0 }
 0x2b1   : > { %v997_v46 = vsel %vm986_vm5, %v977_v50, -inf }
 0x2b4   : > { %v950_v9 = vpop.f32.mrf.mxu2 }
 0x2b5   : > { %v951_v41 = vadd.f32 %v2393_v59, %v950_v9  ;;  %v990_v9 = vsel %vm986_vm5, %v973_v54, -inf }
 0x2b6   : > { %v998_v32 = vmax.f32 %v990_v9, %v997_v46  ;;  %v1113_v9 = vld [vmem:[%s2753_s12] sm:$0x1] }
 0x2b7   : > { %v978_v55 = vmax.f32 %v951_v41, 0.0 }
 0x2bc   : > { %v952_v12 = vpop.f32.mrf.mxu2 }
 0x2bd   : > { %v953_v38 = vadd.f32 %v2393_v59, %v952_v12  ;;  %v994_v12 = vmax.f32 %v988_v61, %v993_v56  ;;  %v1935_v61 = vld [vmem:[%s2752_s11] sm:$0xff] }
 0x2bf   : > { %v979_v51 = vmax.f32 %v953_v38, 0.0 }
 0x2c1   : > { %v1001_v63 = vsel %vm986_vm5, %v979_v51, -inf }
 0x2c2   : > { %v1002_v34 = vmax.f32 %v994_v12, %v1001_v63 }
 0x2c4   : > { %v955_v15 = vpop.f32.mrf.mxu2 }
 0x2c5   : > { %v956_v44 = vadd.f32 %v2393_v59, %v955_v15  ;;  %v999_v15 = vsel %vm986_vm5, %v978_v55, -inf }
 0x2c6   : > { %v1000_v38 = vmax.f32 %v992_v2, %v999_v15  ;;  %v1033_v2 = vld [vmem:[#allocation2] sm:$0x1] }
 0x2c7   : > { %v980_v57 = vmax.f32 %v956_v44, 0.0 }
 0x2c9   : > { %v1003_v21 = vsel %vm986_vm5, %v980_v57, -inf }
 0x2ca   : > { %v1004_v39 = vmax.f32 %v996_v31, %v1003_v21 }
 0x2cc   : > { %v957_v18 = vpop.f32.mrf.mxu2 }
 0x2cd   : > { %v958_v45 = vadd.f32 %v2393_v59, %v957_v18 }
 0x2cf   : > { %v981_v58 = vmax.f32 %v958_v45, 0.0 }
 0x2d4   : > { %v960_v24 = vpop.f32.mrf.mxu2 }
 0x2d5   : > { %v961_v52 = vadd.f32 %v2393_v59, %v960_v24  ;;  %v1005_v24 = vsel %vm986_vm5, %v981_v58, -inf }
 0x2d6   : > { %v1006_v40 = vmax.f32 %v998_v32, %v1005_v24 }
 0x2d7   : > { %v982_v3 = vmax.f32 %v961_v52, 0.0 }
 0x2d9   : > { %v1007_v35 = vsel %vm986_vm5, %v982_v3, -inf }
 0x2da   : > { %v1008_v43 = vmax.f32 %v1000_v38, %v1007_v35 }
 0x2dc   : > { %v962_v36 = vpop.f32.mrf.mxu2 }
 0x2dd   : > { %v963_v47 = vadd.f32 %v2393_v59, %v962_v36 }
 0x2df   : > { %v983_v60 = vmax.f32 %v963_v47, 0.0 }
 0x2e1   : > { %v1009_v27 = vsel %vm986_vm5, %v983_v60, -inf }
 0x2e2   : > { %v1010_v41 = vmax.f32 %v1002_v34, %v1009_v27  ;;  %v1272_v34 = vld [vmem:[%s2754_s13] sm:$0x3] }
 0x2e3   : > { %v1302_v35 = vand.u32 %v1272_v34, %v2282_v5 }
 0x2e4   : > { %v1015_v45 = vmax.f32 %v1008_v43, %v1010_v41 }
 0x2e5   : > { %1311 = vmatpush.bf16.msrb.mxu0 %v1302_v35  ;;  %v1937_v35 = vld [vmem:[%s2758_s17] sm:$0xff] }
 0x2f0   : > { %v965_v42 = vpop.f32.mrf.mxu3 }
 0x2f1   : > { %v966_v33 = vadd.f32 %v2393_v59, %v965_v42 }
 0x2f3   : > { %v984_v4 = vmax.f32 %v966_v33, 0.0 }
 0x2f5   : > { %v1011_v36 = vsel %vm986_vm5, %v984_v4, -inf }
 0x2f6   : > { %v1012_v44 = vmax.f32 %v1004_v39, %v1011_v36 }
 0x2f8   : > { %v967_v18 = vpop.f32.mrf.mxu3 }
 0x2f9   : > { %v968_v29 = vadd.f32 %v2393_v59, %v967_v18 }
 0x2fb   : > { %v985_v37 = vmax.f32 %v968_v29, 0.0 }
 0x2fd   : > { %v1013_v42 = vsel %vm986_vm5, %v985_v37, -inf }
 0x2fe   : > { %v1014_v59 = vmax.f32 %v1006_v40, %v1013_v42 }
 0x300   : > { %v1016_v47 = vmax.f32 %v1012_v44, %v1014_v59  ;;  %v2518_v59 = vld [vmem:[%s2755_s14] ss:$0 sm:$0xff] }
 0x302   : > { %v1017_v48 = vmax.f32 %v1015_v45, %v1016_v47 }
 0x304   : > { %v1018_v49 = vrot.slane %v1017_v48, 4 }
 0x306   : > { %v1019_v50 = vmax.f32 %v1017_v48, %v1018_v49 }
 0x308   : > { %v1020_v51 = vrot.slane %v1019_v50, 2 }
 0x30a   : > { %v1021_v52 = vmax.f32 %v1019_v50, %v1020_v51 }
 0x30c   : > { %v1022_v33 = vrot.slane %v1021_v52, 1 }
 0x30e   : > { %v1023_v53 = vmax.f32 %v1021_v52, %v1022_v33 }
 0x310   : > { %v1024_v54 = vpack.c.bf16 %v1023_v53, %v1023_v53 }
 0x312   : > { %1855 = vmatmul.msk.bf16.vlgmr.msrb.gmra.mxu3 %vm986_vm5, %v1024_v54 }
 0x313   : > { %1130 = vmatpush.bf16.msrb.mxu3 %v1935_v61 }
 0x395   : > { %v1070_v55 = vpop.f32.mrf.mxu3 }
 0x396   : > { %v1071_v56 = vadd.f32 %v1070_v55, %v1033_v2  ;;  %v1938_v55 = vld [vmem:[%s2758_s17 + $0x8] sm:$0xff] }
 0x397   : > { %1536 = vmatpush.bf16.msrb.mxu2 %v1938_v55 }
 0x398   : > { %v1074_v57 = vmax.f32 %v1071_v56, 0.0 }
 0x39a   : > { %v1075_v58 = vpack.c.bf16 %v1074_v57, %v1074_v57 }
 0x39b   : > { %1537 = vmatpush.bf16.msrb.mxu2 %v1937_v35 }
 0x39c   : > { %1864 = vmatmul.msk.bf16.vlgmr.msra.gmra.mxu3 %vm896_vm4, %v1075_v58 }
 0x39d   : > { %v1072_v60 = vpop.f32.mrf.mxu3 }
 0x41f   : > { %v1105_v46 = vpop.f32.mrf.mxu3 }
 0x420   : > { %v1106_v63 = vadd.f32 %v1105_v46, %v1080_v62 }
 0x422   : > { %v1109_v3 = vmax.f32 %v1106_v63, 0.0 }
 0x424   : > { %v1110_v4 = vpack.c.bf16 %v1109_v3, %v1109_v3 }
 0x426   : > { %1869 = vmatmul.msk.bf16.vlgmr.msrb.gmra.mxu3 %vm778_vm3, %v1110_v4 }
 0x427   : > { %v1107_v6 = vpop.f32.mrf.mxu3 }
 0x4a9   : > { %v1132_v12 = vpop.f32.mrf.mxu3 }
 0x4aa   : > { %v1133_v15 = vadd.f32 %v1132_v12, %v1113_v9 }
 0x4ac   : > { %v1141_v18 = vrot.slane %v1133_v15, 6  ;;  %v1137_v21 = vrot.slane %v1133_v15, 7 }
 0x4ae   : > { %1142 = vrot.lane.b32.xlu1 %v1141_v18, %s2116_s22  ;;  %1138 = vrot.lane.b32.xlu0 %v1137_v21, %s2117_s8  ;;  %s1718_s22 = scalar_lea.hbm %s2760_s19, %s1944_s24  ;;  %s1719_s8 = sshll.u32 %s2665_s23, 4  ;;  %s1720_s8 = int_to_ptr.vmem [resolvable:$true] %s1719_s8 }
 0x4af   : > { %s1721_s20 = sshll.u32 %s1718_s22, 4  ;;  %s2066_s24 = scalar_lea.hbm %s2760_s19, 160  ;;  %s1722_s20 = int_to_ptr.hbm [resolvable:$true] %s1721_s20 }
 0x4b0   : > { %s2060_s25 = sshra.s32 %s1722_s20, 4  ;;  %s2061_s25 = int_to_ptr.hbm [resolvable:$true] %s2060_s25 }
 0x4b1   : > { %v1134_v24 = vpop.f32.mrf.mxu3  ;;  %s2062_s29 = scalar_lea.hbm %s2061_s25, 80  ;;  %p2067_p3 = scmp.lt.s32.totalorder %s2061_s25, %s2760_s19 }
 0x4b2   : > { %p2063_p0 = scmp.ne.s32.totalorder %s2061_s25, %s2062_s29  ;;  %p2068_p4 = scmp.lt.s32.totalorder %s2066_s24, %s2062_s29 }
 0x4b4   : > { %p2064_p1 = pnand %p2063_p0, %p2258_p5  ;;  %p2069_p7 = por %p2068_p4, %p2067_p3 }
 0x4b6   : > { %p2065_p2 = pneg %p2064_p1 }
 0x4b8   : > { %p2070_p8 = pnand %p2069_p7, %p2065_p2 }
 0x520   : > { %v1143_v27 = vpop.permute.xlu1 %1142  ;;  %v1139_v29 = vpop.permute.xlu0 %1138 }
 0x521   : > { %v1145_v31 = vsel %vm686_vm0, %v1133_v15, %v1139_v29 }
 0x522   : > { %v1146_v32 = vsel %vm687_vm1, %v1145_v31, %v1143_v27 }
 0x523   : > { %1870 = vmatpush.msk.msra.mxu3 %vm1195_vm6, %v1146_v32 }
 0x524   : > { %1871 = vmatmul.msk.f32.vlgmr.msra.gmra.mxu3 %vm661_vm2, %v2285_v7 }
 0x52c   : > { %1872 = vmatmul.msk.f32.gmra.mxu3 %vm661_vm2, %v2287_v8 }
 0x534   : > { %1873 = vmatmul.msk.f32.gmra.mxu3 %vm661_vm2, %v2292_v10 }
 0x53c   : > { %1874 = vmatmul.msk.f32.gmra.mxu3 %vm661_vm2, %v2294_v11  ;;  %v1936_v11 = vld [vmem:[%s2756_s15] sm:$0xff] }
 0x53d   : > { %1420 = vmatpush.bf16.msrb.mxu1 %v1936_v11 }
 0x544   : > { %1875 = vmatmul.msk.f32.gmra.mxu3 %vm661_vm2, %v2299_v13 }
 0x54c   : > { %1876 = vmatmul.msk.f32.gmra.mxu3 %vm661_vm2, %v2301_v14 }
 0x554   : > { %1877 = vmatmul.msk.f32.gmra.mxu3 %vm661_vm2, %v2306_v16 }
 0x55c   : > { %1878 = vmatmul.msk.f32.gmra.mxu3 %vm661_vm2, %v2308_v17 }
 0x564   : > { %1879 = vmatmul.msk.f32.gmra.mxu3 %vm661_vm2, %v2313_v19 }
 0x56c   : > { %1880 = vmatmul.msk.f32.gmra.mxu3 %vm661_vm2, %v2315_v20 }
 0x574   : > { %1881 = vmatmul.msk.f32.gmra.mxu3 %vm661_vm2, %v2320_v22 }
 0x57c   : > { %1882 = vmatmul.msk.f32.gmra.mxu3 %vm661_vm2, %v2322_v23 }
 0x584   : > { %1883 = vmatmul.msk.f32.gmra.mxu3 %vm661_vm2, %v2327_v25 }
 0x58c   : > { %1884 = vmatmul.msk.f32.gmra.mxu3 %vm661_vm2, %v2329_v26 }
 0x594   : > { %1885 = vmatmul.msk.f32.gmra.mxu3 %vm661_vm2, %v2334_v28 }
 0x59c   : > { %1886 = vmatmul.msk.f32.gmra.mxu3 %vm661_vm2, %v2339_v30 }
 0x5a7   : > { %v1216_v5 = vpop.f32.mrf.mxu3 }
 0x5af   : > { %v1219_v7 = vpop.f32.mrf.mxu3 }
 0x5b0   : > { %v1264_v8 = vpack.c.bf16 %v1219_v7, %v1216_v5 }
 0x5b2   : > { %1887 = vmatmul.msk.bf16.vlgmr.msrb.gmra.mxu0 %vm661_vm2, %v1264_v8 }
 0x5b7   : > { %v1222_v10 = vpop.f32.mrf.mxu3 }
 0x5bf   : > { %v1225_v13 = vpop.f32.mrf.mxu3 }
 0x5c0   : > { %v1265_v14 = vpack.c.bf16 %v1225_v13, %v1222_v10 }
 0x5c2   : > { %1888 = vmatmul.msk.bf16.gmra.mxu0 %vm661_vm2, %v1265_v14 }
 0x5c7   : > { %v1228_v16 = vpop.f32.mrf.mxu3 }
 0x5cf   : > { %v1231_v17 = vpop.f32.mrf.mxu3 }
 0x5d0   : > { %v1266_v19 = vpack.c.bf16 %v1231_v17, %v1228_v16 }
 0x5d2   : > { %1889 = vmatmul.msk.bf16.gmra.mxu0 %vm661_vm2, %v1266_v19 }
 0x5d7   : > { %v1234_v20 = vpop.f32.mrf.mxu3 }
 0x5df   : > { %v1237_v22 = vpop.f32.mrf.mxu3 }
 0x5e0   : > { %v1267_v23 = vpack.c.bf16 %v1237_v22, %v1234_v20 }
 0x5e2   : > { %1890 = vmatmul.msk.bf16.gmra.mxu0 %vm661_vm2, %v1267_v23 }
 0x5e7   : > { %v1240_v25 = vpop.f32.mrf.mxu3 }
 0x5ef   : > { %v1243_v26 = vpop.f32.mrf.mxu3 }
 0x5f0   : > { %v1268_v28 = vpack.c.bf16 %v1243_v26, %v1240_v25 }
 0x5f2   : > { %1891 = vmatmul.msk.bf16.gmra.mxu0 %vm661_vm2, %v1268_v28 }
 0x5f7   : > { %v1246_v30 = vpop.f32.mrf.mxu3 }
 0x5ff   : > { %v1249_v36 = vpop.f32.mrf.mxu3 }
 0x600   : > { %v1269_v37 = vpack.c.bf16 %v1249_v36, %v1246_v30 }
 0x602   : > { %1892 = vmatmul.msk.bf16.gmra.mxu0 %vm661_vm2, %v1269_v37 }
 0x607   : > { %v1252_v38 = vpop.f32.mrf.mxu3 }
 0x60f   : > { %v1255_v39 = vpop.f32.mrf.mxu3 }
 0x610   : > { %v1270_v40 = vpack.c.bf16 %v1255_v39, %v1252_v38 }
 0x612   : > { %1893 = vmatmul.msk.bf16.gmra.mxu0 %vm661_vm2, %v1270_v40  ;;  %v2014_v40 = vld [vmem:[%s2757_s16] ss:$0 sm:$0xff] }
 0x617   : > { %v1258_v41 = vpop.f32.mrf.mxu3 }
 0x61f   : > { %v1261_v42 = vpop.f32.mrf.mxu3 }
 0x620   : > { %v1271_v43 = vpack.c.bf16 %v1261_v42, %v1258_v41 }
 0x622   : > { %1894 = vmatmul.msk.bf16.gmra.mxu0 %vm661_vm2, %v1271_v43 }
 0x62f   : > { %v1313_v44 = vpop.f32.mrf.mxu0 }
 0x630   : > { %v2521_v45 = vadd.f32 %v2518_v59, %v1313_v44 }
 0x632   : > { %v1353_v49 = vmax.f32 %v2521_v45, 0.0 }
 0x637   : > { %v1315_v47 = vpop.f32.mrf.mxu0 }
 0x638   : > { %v2524_v48 = vadd.f32 %v2518_v59, %v1315_v47 }
 0x63a   : > { %v1354_v50 = vmax.f32 %v2524_v48, 0.0 }
 0x63c   : > { %v1369_v51 = vpack.c.bf16 %v1354_v50, %v1353_v49 }
 0x63e   : > { %1899 = vmatmul.msk.bf16.vlgmr.msrb.gmra.mxu1 %vm778_vm3, %v1369_v51 }
 0x63f   : > { %v1318_v52 = vpop.f32.mrf.mxu0 }
 0x640   : > { %v2534_v33 = vadd.f32 %v2518_v59, %v1318_v52 }
 0x642   : > { %v1355_v0 = vmax.f32 %v2534_v33, 0.0 }
 0x647   : > { %v1320_v53 = vpop.f32.mrf.mxu0 }
 0x648   : > { %v2537_v54 = vadd.f32 %v2518_v59, %v1320_v53 }
 0x64a   : > { %v1356_v1 = vmax.f32 %v2537_v54, 0.0 }
 0x64c   : > { %v1370_v2 = vpack.c.bf16 %v1356_v1, %v1355_v0 }
 0x64e   : > { %1900 = vmatmul.msk.bf16.gmra.mxu1 %vm778_vm3, %v1370_v2 }
 0x64f   : > { %v1323_v56 = vpop.f32.mrf.mxu0 }
 0x650   : > { %v2550_v57 = vadd.f32 %v2518_v59, %v1323_v56 }
 0x652   : > { %v1357_v61 = vmax.f32 %v2550_v57, 0.0 }
 0x657   : > { %v1325_v58 = vpop.f32.mrf.mxu0 }
 0x658   : > { %v2553_v60 = vadd.f32 %v2518_v59, %v1325_v58 }
 0x65a   : > { %v1358_v62 = vmax.f32 %v2553_v60, 0.0 }
 0x65c   : > { %v1371_v46 = vpack.c.bf16 %v1358_v62, %v1357_v61 }
 0x65e   : > { %1901 = vmatmul.msk.bf16.gmra.mxu1 %vm778_vm3, %v1371_v46 }
 0x65f   : > { %v1328_v63 = vpop.f32.mrf.mxu0 }
 0x660   : > { %v2563_v3 = vadd.f32 %v2518_v59, %v1328_v63 }
 0x662   : > { %v1359_v9 = vmax.f32 %v2563_v3, 0.0 }
 0x667   : > { %v1330_v4 = vpop.f32.mrf.mxu0 }
 0x668   : > { %v2566_v6 = vadd.f32 %v2518_v59, %v1330_v4 }
 0x66a   : > { %v1360_v12 = vmax.f32 %v2566_v6, 0.0 }
 0x66c   : > { %v1372_v15 = vpack.c.bf16 %v1360_v12, %v1359_v9 }
 0x66e   : > { %1902 = vmatmul.msk.bf16.gmra.mxu1 %vm778_vm3, %v1372_v15 }
 0x66f   : > { %v1333_v18 = vpop.f32.mrf.mxu0 }
 0x670   : > { %v2576_v21 = vadd.f32 %v2518_v59, %v1333_v18 }
 0x672   : > { %v1361_v29 = vmax.f32 %v2576_v21, 0.0 }
 0x677   : > { %v1335_v24 = vpop.f32.mrf.mxu0 }
 0x678   : > { %v2579_v27 = vadd.f32 %v2518_v59, %v1335_v24 }
 0x67a   : > { %v1362_v31 = vmax.f32 %v2579_v27, 0.0 }
 0x67c   : > { %v1373_v32 = vpack.c.bf16 %v1362_v31, %v1361_v29 }
 0x67e   : > { %1903 = vmatmul.msk.bf16.gmra.mxu1 %vm778_vm3, %v1373_v32 }
 0x67f   : > { %v1338_v34 = vpop.f32.mrf.mxu0 }
 0x680   : > { %v2592_v5 = vadd.f32 %v2518_v59, %v1338_v34 }
 0x682   : > { %v1363_v10 = vmax.f32 %v2592_v5, 0.0 }
 0x687   : > { %v1340_v7 = vpop.f32.mrf.mxu0 }
 0x688   : > { %v2595_v8 = vadd.f32 %v2518_v59, %v1340_v7 }
 0x68a   : > { %v1364_v11 = vmax.f32 %v2595_v8, 0.0 }
 0x68c   : > { %v1374_v13 = vpack.c.bf16 %v1364_v11, %v1363_v10 }
 0x68e   : > { %1904 = vmatmul.msk.bf16.gmra.mxu1 %vm778_vm3, %v1374_v13 }
 0x68f   : > { %v1343_v14 = vpop.f32.mrf.mxu0 }
 0x690   : > { %v2605_v16 = vadd.f32 %v2518_v59, %v1343_v14 }
 0x692   : > { %v1365_v20 = vmax.f32 %v2605_v16, 0.0 }
 0x697   : > { %v1345_v17 = vpop.f32.mrf.mxu0 }
 0x698   : > { %v2608_v19 = vadd.f32 %v2518_v59, %v1345_v17 }
 0x69a   : > { %v1366_v22 = vmax.f32 %v2608_v19, 0.0 }
 0x69c   : > { %v1375_v23 = vpack.c.bf16 %v1366_v22, %v1365_v20 }
 0x69e   : > { %1905 = vmatmul.msk.bf16.gmra.mxu1 %vm778_vm3, %v1375_v23 }
 0x69f   : > { %v1348_v25 = vpop.f32.mrf.mxu0 }
 0x6a0   : > { %v2618_v26 = vadd.f32 %v2518_v59, %v1348_v25 }
 0x6a2   : > { %v1367_v36 = vmax.f32 %v2618_v26, 0.0 }
 0x6a7   : > { %v1350_v28 = vpop.f32.mrf.mxu0 }
 0x6a8   : > { %v2621_v30 = vadd.f32 %v2518_v59, %v1350_v28 }
 0x6aa   : > { %v1368_v37 = vmax.f32 %v2621_v30, 0.0 }
 0x6ac   : > { %v1376_v38 = vpack.c.bf16 %v1368_v37, %v1367_v36 }
 0x6ae   : > { %1906 = vmatmul.msk.bf16.gmra.mxu1 %vm778_vm3, %v1376_v38 }
 0x6bb   : > { %v1422_v39 = vpop.f32.mrf.mxu1 }
 0x6bc   : > { %v1423_v41 = vadd.f32 %v2014_v40, %v1422_v39 }
 0x6be   : > { %v1462_v44 = vmax.f32 %v1423_v41, 0.0 }
 0x6c3   : > { %v1424_v42 = vpop.f32.mrf.mxu1 }
 0x6c4   : > { %v1425_v43 = vadd.f32 %v2014_v40, %v1424_v42 }
 0x6c6   : > { %v1463_v59 = vmax.f32 %v1425_v43, 0.0 }
 0x6c8   : > { %v1478_v47 = vpack.c.bf16 %v1463_v59, %v1462_v44 }
 0x6ca   : > { %1915 = vmatmul.msk.bf16.vlgmr.msrb.gmra.mxu2 %vm896_vm4, %v1478_v47 }
 0x6cb   : > { %v1427_v51 = vpop.f32.mrf.mxu1 }
 0x6cc   : > { %v1428_v52 = vadd.f32 %v2014_v40, %v1427_v51 }
 0x6ce   : > { %v1464_v55 = vmax.f32 %v1428_v52, 0.0 }
 0x6d3   : > { %v1429_v53 = vpop.f32.mrf.mxu1 }
 0x6d4   : > { %v1430_v2 = vadd.f32 %v2014_v40, %v1429_v53 }
 0x6d6   : > { %v1465_v56 = vmax.f32 %v1430_v2, 0.0 }
 0x6d8   : > { %v1479_v58 = vpack.c.bf16 %v1465_v56, %v1464_v55 }
 0x6da   : > { %1916 = vmatmul.msk.bf16.gmra.mxu2 %vm896_vm4, %v1479_v58 }
 0x6db   : > { %v1432_v46 = vpop.f32.mrf.mxu1 }
 0x6dc   : > { %v1433_v63 = vadd.f32 %v2014_v40, %v1432_v46 }
 0x6de   : > { %v1466_v18 = vmax.f32 %v1433_v63, 0.0 }
 0x6e3   : > { %v1434_v4 = vpop.f32.mrf.mxu1 }
 0x6e4   : > { %v1435_v15 = vadd.f32 %v2014_v40, %v1434_v4 }
 0x6e6   : > { %v1467_v24 = vmax.f32 %v1435_v15, 0.0 }
 0x6e8   : > { %v1480_v32 = vpack.c.bf16 %v1467_v24, %v1466_v18 }
 0x6ea   : > { %1917 = vmatmul.msk.bf16.gmra.mxu2 %vm896_vm4, %v1480_v32 }
 0x6eb   : > { %v1437_v34 = vpop.f32.mrf.mxu1 }
 0x6ec   : > { %v1438_v35 = vadd.f32 %v2014_v40, %v1437_v34 }
 0x6ee   : > { %v1468_v14 = vmax.f32 %v1438_v35, 0.0 }
 0x6f3   : > { %v1439_v7 = vpop.f32.mrf.mxu1 }
 0x6f4   : > { %v1440_v13 = vadd.f32 %v2014_v40, %v1439_v7 }
 0x6f6   : > { %v1469_v17 = vmax.f32 %v1440_v13, 0.0 }
 0x6f8   : > { %v1481_v23 = vpack.c.bf16 %v1469_v17, %v1468_v14 }
 0x6fa   : > { %1918 = vmatmul.msk.bf16.gmra.mxu2 %vm896_vm4, %v1481_v23 }
 0x6fb   : > { %v1442_v25 = vpop.f32.mrf.mxu1 }
 0x6fc   : > { %v1443_v28 = vadd.f32 %v2014_v40, %v1442_v25 }
 0x6fe   : > { %v1470_v41 = vmax.f32 %v1443_v28, 0.0  ;;  %v2015_v28 = vld [vmem:[%s2759_s18] ss:$0 sm:$0xff] }
 0x703   : > { %v1444_v38 = vpop.f32.mrf.mxu1 }
 0x704   : > { %v1445_v39 = vadd.f32 %v2014_v40, %v1444_v38 }
 0x706   : > { %v1471_v42 = vmax.f32 %v1445_v39, 0.0 }
 0x708   : > { %v1482_v43 = vpack.c.bf16 %v1471_v42, %v1470_v41 }
 0x70a   : > { %1919 = vmatmul.msk.bf16.gmra.mxu2 %vm896_vm4, %v1482_v43 }
 0x70b   : > { %v1447_v44 = vpop.f32.mrf.mxu1 }
 0x70c   : > { %v1448_v59 = vadd.f32 %v2014_v40, %v1447_v44 }
 0x70e   : > { %v1472_v52 = vmax.f32 %v1448_v59, 0.0 }
 0x713   : > { %v1449_v47 = vpop.f32.mrf.mxu1 }
 0x714   : > { %v1450_v51 = vadd.f32 %v2014_v40, %v1449_v47 }
 0x716   : > { %v1473_v53 = vmax.f32 %v1450_v51, 0.0 }
 0x718   : > { %v1483_v2 = vpack.c.bf16 %v1473_v53, %v1472_v52 }
 0x71a   : > { %1920 = vmatmul.msk.bf16.gmra.mxu2 %vm896_vm4, %v1483_v2 }
 0x71b   : > { %v1452_v55 = vpop.f32.mrf.mxu1 }
 0x71c   : > { %v1453_v56 = vadd.f32 %v2014_v40, %v1452_v55 }
 0x71e   : > { %v1474_v63 = vmax.f32 %v1453_v56, 0.0 }
 0x723   : > { %v1454_v58 = vpop.f32.mrf.mxu1 }
 0x724   : > { %v1455_v46 = vadd.f32 %v2014_v40, %v1454_v58 }
 0x726   : > { %v1475_v4 = vmax.f32 %v1455_v46, 0.0 }
 0x728   : > { %v1484_v15 = vpack.c.bf16 %v1475_v4, %v1474_v63 }
 0x72a   : > { %1921 = vmatmul.msk.bf16.gmra.mxu2 %vm896_vm4, %v1484_v15 }
 0x72b   : > { %v1457_v18 = vpop.f32.mrf.mxu1 }
 0x72c   : > { %v1458_v24 = vadd.f32 %v2014_v40, %v1457_v18 }
 0x72e   : > { %v1476_v35 = vmax.f32 %v1458_v24, 0.0 }
 0x733   : > { %v1459_v32 = vpop.f32.mrf.mxu1 }
 0x734   : > { %v1460_v34 = vadd.f32 %v2014_v40, %v1459_v32 }
 0x736   : > { %v1477_v7 = vmax.f32 %v1460_v34, 0.0 }
 0x738   : > { %v1485_v13 = vpack.c.bf16 %v1477_v7, %v1476_v35  ;;  %v1616_v35 = vlaneseq }
 0x73a   : > { %1922 = vmatmul.msk.bf16.gmra.mxu2 %vm896_vm4, %v1485_v13  ;;  %v1617_v7 = vshrl.u32 %v1616_v35, 7 }
 0x73c   : > { %2001 = vset.pattern.permute.xlu1 %v1617_v7 }
 0x74d   : > { %v1539_v14 = vpop.f32.mrf.mxu2 }
 0x74e   : > { %v1540_v38 = vadd.f32 %v2015_v28, %v1539_v14 }
 0x750   : > { %v1579_v42 = vsel %vm986_vm5, %v1540_v38, -inf }
 0x755   : > { %v1541_v17 = vpop.f32.mrf.mxu2 }
 0x756   : > { %v1542_v44 = vadd.f32 %v2015_v28, %v1541_v17  ;;  %v1624_v17 = vadd.s32 8, %v1617_v7 }
 0x758   : > { %v1580_v51 = vsel %vm986_vm5, %v1542_v44, -inf  ;;  %2002 = vset.pattern.permute.xlu2 %v1624_v17 }
 0x75d   : > { %v1544_v23 = vpop.f32.mrf.mxu2 }
 0x75e   : > { %v1545_v2 = vadd.f32 %v2015_v28, %v1544_v23 }
 0x760   : > { %v1581_v58 = vsel %vm986_vm5, %v1545_v2, -inf }
 0x765   : > { %v1546_v25 = vpop.f32.mrf.mxu2 }
 0x76d   : > { %v1549_v39 = vpop.f32.mrf.mxu2 }
 0x76e   : > { %v1550_v41 = vadd.f32 %v2015_v28, %v1549_v39 }
 0x770   : > { %v1583_v40 = vsel %vm986_vm5, %v1550_v41, -inf }
 0x771   : > { %v1584_v43 = vmax.f32 %v1579_v42, %v1583_v40 }
 0x775   : > { %v1551_v59 = vpop.f32.mrf.mxu2 }
 0x776   : > { %v1552_v47 = vadd.f32 %v2015_v28, %v1551_v59 }
 0x778   : > { %v1585_v52 = vsel %vm986_vm5, %v1552_v47, -inf }
 0x779   : > { %v1586_v53 = vmax.f32 %v1580_v51, %v1585_v52 }
 0x77d   : > { %v1554_v55 = vpop.f32.mrf.mxu2 }
 0x77e   : > { %v1555_v56 = vadd.f32 %v2015_v28, %v1554_v55 }
 0x780   : > { %v1587_v46 = vsel %vm986_vm5, %v1555_v56, -inf }
 0x781   : > { %v1588_v63 = vmax.f32 %v1581_v58, %v1587_v46  ;;  %v1547_v58 = vadd.f32 %v2015_v28, %v1546_v25 }
 0x783   : > { %v1582_v35 = vsel %vm986_vm5, %v1547_v58, -inf }
 0x785   : > { %v1556_v4 = vpop.f32.mrf.mxu2 }
 0x786   : > { %v1557_v56 = vadd.f32 %v2015_v28, %v1556_v4 }
 0x78d   : > { %v1559_v15 = vpop.f32.mrf.mxu2 }
 0x78e   : > { %v1560_v13 = vadd.f32 %v2015_v28, %v1559_v15 }
 0x790   : > { %v1591_v38 = vsel %vm986_vm5, %v1560_v13, -inf }
 0x791   : > { %v1592_v44 = vmax.f32 %v1584_v43, %v1591_v38 }
 0x795   : > { %v1561_v18 = vpop.f32.mrf.mxu2 }
 0x796   : > { %v1562_v14 = vadd.f32 %v2015_v28, %v1561_v18  ;;  %v1589_v18 = vsel %vm986_vm5, %v1557_v56, -inf  ;;  %v1660_v56 = vadd.s32 56, %v1617_v7 }
 0x798   : > { %v1593_v39 = vsel %vm986_vm5, %v1562_v14, -inf  ;;  %2009 = vset.pattern.permute.xlu0 %v1660_v56 }
 0x799   : > { %v1594_v59 = vmax.f32 %v1586_v53, %v1593_v39  ;;  %v1590_v53 = vmax.f32 %v1582_v35, %v1589_v18 }
 0x79d   : > { %v1564_v24 = vpop.f32.mrf.mxu2 }
 0x79e   : > { %v1565_v46 = vadd.f32 %v2015_v28, %v1564_v24 }
 0x7a0   : > { %v1595_v13 = vsel %vm986_vm5, %v1565_v46, -inf }
 0x7a1   : > { %v1596_v38 = vmax.f32 %v1588_v63, %v1595_v13  ;;  %v1648_v63 = vadd.s32 40, %v1617_v7 }
 0x7a5   : > { %v1566_v32 = vpop.f32.mrf.mxu2 }
 0x7a6   : > { %v1567_v15 = vadd.f32 %v2015_v28, %v1566_v32 }
 0x7a8   : > { %v1597_v43 = vsel %vm986_vm5, %v1567_v15, -inf }
 0x7a9   : > { %v1598_v39 = vmax.f32 %v1590_v53, %v1597_v43 }
 0x7ad   : > { %v1569_v34 = vpop.f32.mrf.mxu2 }
 0x7ae   : > { %v1570_v23 = vadd.f32 %v2015_v28, %v1569_v34 }
 0x7b0   : > { %v1599_v42 = vsel %vm986_vm5, %v1570_v23, -inf }
 0x7b1   : > { %v1600_v51 = vmax.f32 %v1592_v44, %v1599_v42 }
 0x7b5   : > { %v1571_v41 = vpop.f32.mrf.mxu2 }
 0x7b6   : > { %v1572_v40 = vadd.f32 %v2015_v28, %v1571_v41 }
 0x7b8   : > { %v1601_v47 = vsel %vm986_vm5, %v1572_v40, -inf }
 0x7b9   : > { %v1602_v52 = vmax.f32 %v1594_v59, %v1601_v47 }
 0x7bb   : > { %v1607_v2 = vmax.f32 %v1600_v51, %v1602_v52  ;;  %v1630_v52 = vadd.s32 16, %v1617_v7 }
 0x7bd   : > { %v1574_v55 = vpop.f32.mrf.mxu2 }
 0x7be   : > { %v1575_v34 = vadd.f32 %v2015_v28, %v1574_v55  ;;  %v1636_v55 = vadd.s32 24, %v1617_v7 }
 0x7c0   : > { %v1603_v17 = vsel %vm986_vm5, %v1575_v34, -inf }
 0x7c1   : > { %v1604_v4 = vmax.f32 %v1596_v38, %v1603_v17 }
 0x7c5   : > { %v1576_v14 = vpop.f32.mrf.mxu2 }
 0x7c6   : > { %v1577_v23 = vadd.f32 %v2015_v28, %v1576_v14  ;;  %v1642_v28 = vadd.s32 32, %v1617_v7 }
 0x7c8   : > { %v1605_v25 = vsel %vm986_vm5, %v1577_v23, -inf }
 0x7c9   : > { %v1606_v24 = vmax.f32 %v1598_v39, %v1605_v25 }
 0x7cb   : > { %v1608_v32 = vmax.f32 %v1604_v4, %v1606_v24 }
 0x7cd   : > { %v1609_v41 = vmax.f32 %v1607_v2, %v1608_v32  ;;  %v1654_v2 = vadd.s32 48, %v1617_v7 }
 0x7cf   : > { %v1610_v42 = vrot.slane %v1609_v41, 4 }
 0x7d1   : > { %v1611_v40 = vmax.f32 %v1609_v41, %v1610_v42 }
 0x7d3   : > { %v1612_v44 = vrot.slane %v1611_v40, 2 }
 0x7d5   : > { %v1613_v59 = vmax.f32 %v1611_v40, %v1612_v44 }
 0x7d7   : > { %v1614_v47 = vrot.slane %v1613_v59, 1 }
 0x7d9   : > { %v1615_v51 = vmax.f32 %v1613_v59, %v1614_v47 }
 0x7db   : > { %1626 = vperm.xlu2 %2002, %v1615_v51   ;;  %1620 = vperm.xlu1 %2001, %v1615_v51  }
 0x7e3   : > { %2003 = vset.pattern.permute.xlu2 %v1630_v52  ;;  %2004 = vset.pattern.permute.xlu1 %v1636_v55 }
 0x7eb   : > { %1632 = vperm.xlu2 %2003, %v1615_v51   ;;  %1638 = vperm.xlu1 %2004, %v1615_v51  }
 0x7f3   : > { %2005 = vset.pattern.permute.xlu2 %v1642_v28  ;;  %2006 = vset.pattern.permute.xlu1 %v1648_v63 }
 0x7fb   : > { %1644 = vperm.xlu2 %2005, %v1615_v51   ;;  %1650 = vperm.xlu1 %2006, %v1615_v51  }
 0x803   : > { %2007 = vset.pattern.permute.xlu2 %v1654_v2  ;;  %2008 = vset.pattern.permute.xlu1 %v1660_v56 }
 0x80b   : > { %1656 = vperm.xlu2 %2007, %v1615_v51   ;;  %1662 = vperm.xlu1 %2008, %v1615_v51  }
 0x831   : > { %1672 = vxpose.xlu2.b32.start [1/16] (narrow) %v1353_v49, 16 }
 0x835   : > { %v1627_v58 = vpop.permute.xlu2 %1626 }
 0x836   : > { %1665 = vst [vmem:[%s2665_s23 + $0x8] sm:$0xff] %v1627_v58 }
 0x839   : > { %1673 = vxpose.xlu2.b32.cont [2/16] (narrow) %v1354_v50, 16 }
 0x841   : > { %1674 = vxpose.xlu2.b32.cont [3/16] (narrow) %v1355_v0, 16 }
 0x845   : > { %v1633_v7 = vpop.permute.xlu2 %1632 }
 0x846   : > { %1666 = vst [vmem:[%s2665_s23 + $0x10] sm:$0xff] %v1633_v7 }
 0x849   : > { %1675 = vxpose.xlu2.b32.cont [4/16] (narrow) %v1356_v1, 16 }
 0x84d   : > { %v1621_v45 = vpop.permute.xlu1 %1620 }
 0x84e   : > { %1664 = vst [vmem:[%s2665_s23] sm:$0xff] %v1621_v45 }
 0x851   : > { %1676 = vxpose.xlu2.b32.cont [5/16] (narrow) %v1357_v61, 16 }
 0x855   : > { %v1645_v49 = vpop.permute.xlu2 %1644 }
 0x856   : > { %1668 = vst [vmem:[%s2665_s23 + $0x20] sm:$0xff] %v1645_v49 }
 0x859   : > { %1677 = vxpose.xlu2.b32.cont [6/16] (narrow) %v1358_v62, 16 }
 0x85d   : > { %v1639_v48 = vpop.permute.xlu1 %1638 }
 0x85e   : > { %1667 = vst [vmem:[%s2665_s23 + $0x18] sm:$0xff] %v1639_v48 }
 0x861   : > { %1678 = vxpose.xlu2.b32.cont [7/16] (narrow) %v1359_v9, 16 }
 0x865   : > { %v1657_v50 = vpop.permute.xlu2 %1656 }
 0x866   : > { %1670 = vst [vmem:[%s2665_s23 + $0x30] sm:$0xff] %v1657_v50 }
 0x869   : > { %1679 = vxpose.xlu2.b32.cont [8/16] (narrow) %v1360_v12, 16 }
 0x86d   : > { %v1651_v33 = vpop.permute.xlu1 %1650 }
 0x86e   : > { %1669 = vst [vmem:[%s2665_s23 + $0x28] sm:$0xff] %v1651_v33 }
 0x871   : > { %1680 = vxpose.xlu2.b32.cont [9/16] (narrow) %v1361_v29, 16 }
 0x879   : > { %1681 = vxpose.xlu2.b32.cont [10/16] (narrow) %v1362_v31, 16 }
 0x87d   : > { %v1663_v54 = vpop.permute.xlu1 %1662 }
 0x87e   : > { %1671 = vst [vmem:[%s2665_s23 + $0x38] sm:$0xff] %v1663_v54 }
 0x881   : > { %1682 = vxpose.xlu2.b32.cont [11/16] (narrow) %v1363_v10, 16 }
 0x889   : > { %1683 = vxpose.xlu2.b32.cont [12/16] (narrow) %v1364_v11, 16 }
 0x891   : > { %1684 = vxpose.xlu2.b32.cont [13/16] (narrow) %v1365_v20, 16 }
 0x899   : > { %1685 = vxpose.xlu2.b32.cont [14/16] (narrow) %v1366_v22, 16 }
 0x8a1   : > { %1686 = vxpose.xlu2.b32.cont [15/16] (narrow) %v1367_v36, 16 }
 0x8a9   : > { %1687 = vxpose.xlu2.b32.end [16/16] (narrow) %v1368_v37, 16 }
 0x8ca   : > { %v1688_v0 = vpop.trf.xlu2 }
 0x8cb   : > { %1704 = vst [vmem:[%s2665_s23 + $0x40] sm:$0xff] %v1688_v0 }
 0x8d2   : > { %v1689_v1 = vpop.trf.xlu2 }
 0x8d3   : > { %1705 = vst [vmem:[%s2665_s23 + $0x48] sm:$0xff] %v1689_v1 }
 0x8d4   : > { %2073 = shalt.err (!%p2070_p8)
}
 0x8d5   : > { %s2118_s26 = smov 128   ;;  %s2119_s23 = smov 8  }
 0x8d6   : > { %1949 = dma.vmem_to_hbm [thread:$0]  (%p2258_p5), %s1720_s8, 1280, %s1722_s20, %s1707_s2, %s2118_s26, %s2118_s26, %s2119_s23  }
 0x8d7 PF: > { %p1961_p9 = scmp.ge.s32.totalorder %s2112_s21, 2  ;;  %s1736_s4 = sand.u32 1, %s2100_s0  }
 0x8d8   : > { %s1737_s1 = scalar_lea.sflag [#allocation4], %s1736_s4 }
 0x8d9   : > { %p1956_p10 = pnand %p1961_p9, %p2262_p6 }
 0x8db   : > { %p1957_p11 = pneg %p1956_p10 }
 0x8dd   : > { %2095 = dma.done.wait (%p1957_p11), %s1737_s1, 1280  }
 0x8de   : > { %2097 = vsyncadd (%p1957_p11), %s1737_s1, 4294966016  ;;  %s2784_s21 = sld [smem:[#allocation9_spill]]  ;;  %s2787_s0 = smov %s2104_s30 }
 0x8df   : > { %s2785_s25 = sld [smem:[#allocation8_spill]] }
 0x8e0   : > { %s2786_s20 = sld [smem:[#allocation10_spill]] }
 0x8e4   : > { %p30_p12 = scmp.ge.s32.totalorder %s2784_s21, 4  }
 0x8e5   : > { %s2788_s30 = smov %s2785_s25 }
 0x8e6   :  { %32 = sbr.rel (!%p30_p12) target bundleno = 11 (0xb), region = 136 }
 0x8eb   :  { %1743 = vsyncpa [#allocation3], 1 }
 0x8ec   :  { %1745 = vsyncpa [#allocation3 + $0x1], 1 }
 0x8ed   :  { %1746 = vsyncpa [#allocation4], 1 }
 0x8ee   :  { %1748 = vsyncpa [#allocation4 + $0x1], 1 }

</bundles_post_ra>
